<compile_context>
chip_gen: v5e
topology: v5e:2x2
jax: 0.10.0
libtpu: 0.0.40
codegen_flags: <defaults>
</compile_context>

<pallas_src>
import math

import jax
import jax.numpy as jnp
from jax.experimental import pallas as pl
from jax.experimental.pallas import tpu as pltpu

KERSIZE = (3, 5, 10)      # module default kersize=[3, 5, 10]
REDUCTION_RATIO = 2       # module default
_SCORE_STRIP = 512        # query-time strip for the (V, V) sigmoid score tile
_LANE = 128


def _make_kernel(C, T, Tp):
    """Build the per-batch-row kernel, closed over static C / T / padded T."""

    def kernel(x_ref, wconv_ref, bconv_ref, wattn_ref, battn_ref,
               wcat_ref, bcat_ref, w1_ref, b1_ref, w2_ref, b2_ref, out_ref):
        xp = x_ref[...].astype(jnp.float32)            # (C, Tp) channel-major
        x = xp[:, :T] if Tp != T else xp               # valid (unpadded) region

        feats = []
        for br, K in enumerate(KERSIZE):
            V = T - K + 1

            # depthwise "valid" conv along time: K shifted MACs on the VPU.
            wbr = wconv_ref[br]                        # (C, kmax) taps
            acc = jnp.zeros((C, V), jnp.float32)
            for j in range(K):
                acc = acc + wbr[:, j:j + 1] * x[:, j:j + V]
            y = acc + bconv_ref[br]                    # (C, V) f32
            yb = y.astype(jnp.bfloat16)                # shared MXU operand

            # Q/K/V projections (torch (out, in) layout).  1/sqrt(C) is already
            # folded into W_q / b_q at parameter-packing time.
            q = (jnp.dot(wattn_ref[br, 0], yb,
                         preferred_element_type=jnp.float32) + battn_ref[br, 0])
            k = (jnp.dot(wattn_ref[br, 1], yb,
                         preferred_element_type=jnp.float32) + battn_ref[br, 1])
            v = (jnp.dot(wattn_ref[br, 2], yb,
                         preferred_element_type=jnp.float32) + battn_ref[br, 2])

            # scores[t, s] = sigmoid(q_t . k_s); pooling over query time t is
            # linear, so only m[s] = mean_t scores[t, s] is needed.  Strip-mine
            # over t so the live f32 score slab is at most (_SCORE_STRIP, V).
            qt = jnp.transpose(q).astype(jnp.bfloat16)   # (V, C): one transpose
            kb = k.astype(jnp.bfloat16)                  # (C, V)
            ssum = jnp.zeros((1, V), jnp.float32)
            for t0 in range(0, V, _SCORE_STRIP):
                tq = min(_SCORE_STRIP, V - t0)
                s = jnp.dot(qt[t0:t0 + tq, :], kb,
                            preferred_element_type=jnp.float32)   # (tq, V)
                ssum = ssum + jnp.sum(jax.nn.sigmoid(s), axis=0, keepdims=True)
            m = ssum * (1.0 / V)                         # (1, V) mean over t

            # pooled[c] = sum_s v[c, s] * m[s]   (== mean_t of (scores @ v))
            pooled = jnp.sum(v * m, axis=1, keepdims=True)          # (C, 1)
            f = (jnp.dot(wattn_ref[br, 3], pooled.astype(jnp.bfloat16),
                         preferred_element_type=jnp.float32)
                 + battn_ref[br, 3])                                # (C, 1)
            feats.append(jnp.maximum(f, 0.0))            # avg-pool + ReLU done

        # feature_concate_fc: Linear(3, 1) across the three branch features
        z = (feats[0] * wcat_ref[0, 0] + feats[1] * wcat_ref[0, 1]
             + feats[2] * wcat_ref[0, 2] + bcat_ref[0, 0])          # (C, 1)

        # fc1 -> ReLU -> fc2 -> sigmoid (tiny matvecs, kept in f32)
        h1 = jnp.maximum(
            jnp.dot(w1_ref[...], z, preferred_element_type=jnp.float32)
            + b1_ref[...], 0.0)                                     # (Cr, 1)
        gate = jax.nn.sigmoid(
            jnp.dot(w2_ref[...], h1, preferred_element_type=jnp.float32)
            + b2_ref[...])                                          # (C, 1)

        # channel gating; full lane-dense (C, Tp) store (pad lanes are zero)
        out_ref[...] = (xp * gate).astype(out_ref.dtype)

    return kernel


def channel_time_sense_attention_se(x, p):
    """x: (B, C, T) -> (B, C, T).  `p` is the packed dict from `pack_params`."""
    B, C, T = x.shape
    if T < max(KERSIZE):
        raise ValueError(f"T={T} must be >= the largest conv kernel "
                         f"{max(KERSIZE)} (valid convolution).")

    # lane-dense time axis: pad T to a multiple of 128 so kernel stores are
    # unmasked full-lane vst's (padded region is zero and sliced off below).
    Tp = ((T + _LANE - 1) // _LANE) * _LANE
    xp = x if Tp == T else jnp.pad(x, ((0, 0), (0, 0), (0, Tp - T)))

    def rep(a):                      # whole-array, replicated VMEM block
        nd = a.ndim
        return pl.BlockSpec(a.shape, lambda i, _nd=nd: (0,) * _nd)

    smem = pl.BlockSpec(memory_space=pltpu.MemorySpace.SMEM)

    out = pl.pallas_call(
        _make_kernel(C, T, Tp),
        out_shape=jax.ShapeDtypeStruct((B, C, Tp), x.dtype),
        grid=(B,),                                       # one batch row / step
        in_specs=[
            pl.BlockSpec((None, C, Tp), lambda i: (i, 0, 0)),        # x row
            rep(p["wconv"]), rep(p["bconv"]),                        # convs
            rep(p["wattn"]), rep(p["battn"]),                        # attention
            smem, smem,                                              # 3->1 fuse
            rep(p["w1"]), rep(p["b1"]),                              # fc1
            rep(p["w2"]), rep(p["b2"]),                              # fc2
        ],
        out_specs=pl.BlockSpec((None, C, Tp), lambda i: (i, 0, 0)),
        compiler_params=pltpu.CompilerParams(
            dimension_semantics=("parallel",),
            vmem_limit_bytes=48 * 1024 * 1024),
    )(xp, p["wconv"], p["bconv"], p["wattn"], p["battn"],
      p["wcat"], p["bcat"], p["w1"], p["b1"], p["w2"], p["b2"])

    return out if Tp == T else out[:, :, :T]


def init_params(key, C):
    """Deterministic synthetic params in torch-equivalent layout.

      wconv[br, c, j]  == Conv1d.weight[c, 0, j]   (depthwise taps)
      bconv[br, c, 0]  == Conv1d.bias[c]
      wattn[br]        == [W_q, W_k, W_v, W_out], each (out, in)
      battn[br, i, :, 0] == corresponding bias
      wcat/bcat        == feature_concate_fc (Linear(3, 1))
      w1/b1, w2/b2     == fc1 (C -> C//r), fc2 (C//r -> C)
    """
    Cr = C // REDUCTION_RATIO
    kmax = max(KERSIZE)
    keys = jax.random.split(key, 14)

    def u(k, shape, fan_in):
        bound = 1.0 / math.sqrt(fan_in)
        return jax.random.uniform(k, shape, jnp.float32, -bound, bound)

    wconv = jnp.zeros((3, C, kmax), jnp.float32)
    bconv = jnp.zeros((3, C, 1), jnp.float32)
    for br, K in enumerate(KERSIZE):
        wconv = wconv.at[br, :, :K].set(u(keys[br], (C, K), K))
        bconv = bconv.at[br].set(u(keys[3 + br], (C, 1), K))

    return {
        "wconv": wconv, "bconv": bconv,
        "wattn": u(keys[6], (3, 4, C, C), C),
        "battn": u(keys[7], (3, 4, C, 1), C),
        "wcat": u(keys[8], (1, 3), 3), "bcat": u(keys[9], (1, 1), 3),
        "w1": u(keys[10], (Cr, C), C), "b1": u(keys[11], (Cr, 1), C),
        "w2": u(keys[12], (C, Cr), Cr), "b2": u(keys[13], (C, 1), Cr),
    }


def pack_params(p, C):
    """One-time (host-side) packing for the kernel: fold 1/sqrt(C) into the
    query projection and cast the attention weight stack to bf16 (MXU)."""
    scale = 1.0 / math.sqrt(C)
    kp = dict(p)
    kp["wattn"] = p["wattn"].at[:, 0].multiply(scale).astype(jnp.bfloat16)
    kp["battn"] = p["battn"].at[:, 0].multiply(scale)
    return kp


def reference_jax(x, p):
    """Pure-jnp reference mirroring the PyTorch forward literally (per-time
    out-projection, then AdaptiveAvgPool1d), used only for validation."""
    B, C, T = x.shape
    scale = 1.0 / math.sqrt(C)
    feats = []
    for br, K in enumerate(KERSIZE):
        V = T - K + 1
        y = sum(p["wconv"][br, :, j][None, :, None] * x[:, :, j:j + V]
                for j in range(K)) + p["bconv"][br][None]        # (B, C, V)
        yt = jnp.transpose(y, (0, 2, 1))                         # (B, V, C)
        Wq, Wk, Wv, Wo = (p["wattn"][br, i] for i in range(4))
        bq, bk, bv, bo = (p["battn"][br, i][:, 0] for i in range(4))
        q = yt @ Wq.T + bq
        k = yt @ Wk.T + bk
        v = yt @ Wv.T + bv
        s = jax.nn.sigmoid(jnp.einsum("btc,bsc->bts", q, k) * scale)
        att = jnp.einsum("bts,bsc->btc", s, v)
        out = att @ Wo.T + bo                                    # (B, V, C)
        feats.append(jnp.maximum(out.mean(axis=1), 0.0))         # pool + ReLU
    feat = jnp.stack(feats, axis=-1)                             # (B, C, 3)
    z = feat @ p["wcat"][0] + p["bcat"][0, 0]                    # (B, C)
    h1 = jnp.maximum(z @ p["w1"].T + p["b1"][:, 0], 0.0)
    h2 = jax.nn.sigmoid(h1 @ p["w2"].T + p["b2"][:, 0])
    return x * h2[:, :, None]


if __name__ == "__main__":
    # small but non-degenerate: C=16 -> reduced=8, T=32 >= max kersize (10),
    # B=4 -> grid=(4,) exercises the parallel per-row pipeline and T padding.
    B, C, T = 4, 16, 32
    key = jax.random.PRNGKey(0)
    kx, kp = jax.random.split(key)
    x = jax.random.normal(kx, (B, C, T), jnp.float32)
    params = init_params(kp, C)
    kparams = pack_params(params, C)

    out = jax.block_until_ready(channel_time_sense_attention_se(x, kparams))

    with jax.default_matmul_precision("float32"):     # accurate f32 reference
        ref = jax.block_until_ready(reference_jax(x, params))

    assert out.shape == (B, C, T)
    err = float(jnp.max(jnp.abs(out - ref)))
    # tolerance budgets for bf16 MXU operands (f32 accumulation) vs the f32
    # reference; real bugs (wrong transpose / bias / scale) give O(0.3+).
    assert jnp.allclose(out, ref, rtol=2e-2, atol=2e-2), f"max abs diff {err}"
    print("KERNEL_OK")
</pallas_src>

<mosaic_0001>
module attributes {stable_mosaic.version = 11 : i64} {
  func.func @kernel(%arg0: i32, %arg1: memref<1x16x128xf32, #tpu.memory_space<vmem>>, %arg2: memref<3x16x10xf32, #tpu.memory_space<vmem>>, %arg3: memref<3x16x1xf32, #tpu.memory_space<vmem>>, %arg4: memref<3x4x16x16xbf16, #tpu.memory_space<vmem>>, %arg5: memref<3x4x16x1xf32, #tpu.memory_space<vmem>>, %arg6: memref<1x3xf32, #tpu.memory_space<smem>>, %arg7: memref<1x1xf32, #tpu.memory_space<smem>>, %arg8: memref<8x16xf32, #tpu.memory_space<vmem>>, %arg9: memref<8x1xf32, #tpu.memory_space<vmem>>, %arg10: memref<16x8xf32, #tpu.memory_space<vmem>>, %arg11: memref<16x1xf32, #tpu.memory_space<vmem>>, %arg12: memref<1x16x128xf32, #tpu.memory_space<vmem>>) attributes {dimension_semantics = [#tpu.dimension_semantics<parallel>], iteration_bounds = array<i64: 4>, scalar_prefetch = 0 : i64, scratch_operands = 0 : i64, tpu.core_type = #tpu.core_type<tc>, window_params = [{transform_indices = @transform_0, window_bounds = array<i64: 1, 16, 128>}, {pipeline_mode = #tpu.pipeline_mode<synchronous>, transform_indices = @transform_1, window_bounds = array<i64: 3, 16, 10>}, {pipeline_mode = #tpu.pipeline_mode<synchronous>, transform_indices = @transform_2, window_bounds = array<i64: 3, 16, 1>}, {pipeline_mode = #tpu.pipeline_mode<synchronous>, transform_indices = @transform_3, window_bounds = array<i64: 3, 4, 16, 16>}, {pipeline_mode = #tpu.pipeline_mode<synchronous>, transform_indices = @transform_4, window_bounds = array<i64: 3, 4, 16, 1>}, {transform_indices = @transform_5, window_bounds = array<i64: 1, 3>}, {transform_indices = @transform_6, window_bounds = array<i64: 1, 1>}, {pipeline_mode = #tpu.pipeline_mode<synchronous>, transform_indices = @transform_7, window_bounds = array<i64: 8, 16>}, {pipeline_mode = #tpu.pipeline_mode<synchronous>, transform_indices = @transform_8, window_bounds = array<i64: 8, 1>}, {pipeline_mode = #tpu.pipeline_mode<synchronous>, transform_indices = @transform_9, window_bounds = array<i64: 16, 8>}, {pipeline_mode = #tpu.pipeline_mode<synchronous>, transform_indices = @transform_10, window_bounds = array<i64: 16, 1>}, {transform_indices = @transform_11, window_bounds = array<i64: 1, 16, 128>}]} {
    %c0 = arith.constant 0 : index
    %c0_0 = arith.constant 0 : index
    %c0_1 = arith.constant 0 : index
    %0 = vector.load %arg1[%c0, %c0_0, %c0_1] : memref<1x16x128xf32, #tpu.memory_space<vmem>>, vector<1x16x128xf32>
    %1 = vector.shape_cast %0 : vector<1x16x128xf32> to vector<16x128xf32>
    %2 = vector.extract_strided_slice %1 {offsets = [0, 0], sizes = [16, 32], strides = [1, 1]} : vector<16x128xf32> to vector<16x32xf32>
    %c0_2 = arith.constant 0 : index
    %c0_3 = arith.constant 0 : index
    %c0_4 = arith.constant 0 : index
    %3 = vector.load %arg2[%c0_2, %c0_3, %c0_4] : memref<3x16x10xf32, #tpu.memory_space<vmem>>, vector<1x16x10xf32>
    %4 = vector.shape_cast %3 : vector<1x16x10xf32> to vector<16x10xf32>
    %cst = arith.constant 0.000000e+00 : f32
    %5 = vector.broadcast %cst : f32 to vector<16x30xf32>
    %6 = vector.extract_strided_slice %4 {offsets = [0, 0], sizes = [16, 1], strides = [1, 1]} : vector<16x10xf32> to vector<16x1xf32>
    %7 = vector.extract_strided_slice %2 {offsets = [0, 0], sizes = [16, 30], strides = [1, 1]} : vector<16x32xf32> to vector<16x30xf32>
    %8 = vector.broadcast %6 : vector<16x1xf32> to vector<16x30xf32>
    %9 = arith.mulf %8, %7 : vector<16x30xf32>
    %10 = arith.addf %5, %9 : vector<16x30xf32>
    %11 = vector.extract_strided_slice %4 {offsets = [0, 1], sizes = [16, 1], strides = [1, 1]} : vector<16x10xf32> to vector<16x1xf32>
    %12 = vector.extract_strided_slice %2 {offsets = [0, 1], sizes = [16, 30], strides = [1, 1]} : vector<16x32xf32> to vector<16x30xf32>
    %13 = vector.broadcast %11 : vector<16x1xf32> to vector<16x30xf32>
    %14 = arith.mulf %13, %12 : vector<16x30xf32>
    %15 = arith.addf %10, %14 : vector<16x30xf32>
    %16 = vector.extract_strided_slice %4 {offsets = [0, 2], sizes = [16, 1], strides = [1, 1]} : vector<16x10xf32> to vector<16x1xf32>
    %17 = vector.extract_strided_slice %2 {offsets = [0, 2], sizes = [16, 30], strides = [1, 1]} : vector<16x32xf32> to vector<16x30xf32>
    %18 = vector.broadcast %16 : vector<16x1xf32> to vector<16x30xf32>
    %19 = arith.mulf %18, %17 : vector<16x30xf32>
    %20 = arith.addf %15, %19 : vector<16x30xf32>
    %c0_5 = arith.constant 0 : index
    %c0_6 = arith.constant 0 : index
    %c0_7 = arith.constant 0 : index
    %21 = vector.load %arg3[%c0_5, %c0_6, %c0_7] : memref<3x16x1xf32, #tpu.memory_space<vmem>>, vector<1x16x1xf32>
    %22 = vector.shape_cast %21 : vector<1x16x1xf32> to vector<16x1xf32>
    %23 = vector.broadcast %22 : vector<16x1xf32> to vector<16x30xf32>
    %24 = arith.addf %20, %23 : vector<16x30xf32>
    %25 = arith.truncf %24 : vector<16x30xf32> to vector<16x30xbf16>
    %c0_8 = arith.constant 0 : index
    %c0_9 = arith.constant 0 : index
    %c0_10 = arith.constant 0 : index
    %c0_11 = arith.constant 0 : index
    %26 = vector.load %arg4[%c0_8, %c0_9, %c0_10, %c0_11] : memref<3x4x16x16xbf16, #tpu.memory_space<vmem>>, vector<1x1x16x16xbf16>
    %27 = vector.shape_cast %26 : vector<1x1x16x16xbf16> to vector<16x16xbf16>
    %cst_12 = arith.constant dense<0.000000e+00> : vector<16x30xf32>
    %28 = tpu.matmul %27, %25, %cst_12 {dimension_numbers = #tpu.dot_dimension_numbers<[1], [0], [0], [1], [0, 0, 1, 1], [], []>} : vector<16x16xbf16>, vector<16x30xbf16>, vector<16x30xf32> -> vector<16x30xf32>
    %c0_13 = arith.constant 0 : index
    %c0_14 = arith.constant 0 : index
    %c0_15 = arith.constant 0 : index
    %c0_16 = arith.constant 0 : index
    %29 = vector.load %arg5[%c0_13, %c0_14, %c0_15, %c0_16] : memref<3x4x16x1xf32, #tpu.memory_space<vmem>>, vector<1x1x16x1xf32>
    %30 = vector.shape_cast %29 : vector<1x1x16x1xf32> to vector<16x1xf32>
    %31 = vector.broadcast %30 : vector<16x1xf32> to vector<16x30xf32>
    %32 = arith.addf %28, %31 : vector<16x30xf32>
    %c0_17 = arith.constant 0 : index
    %c1 = arith.constant 1 : index
    %c0_18 = arith.constant 0 : index
    %c0_19 = arith.constant 0 : index
    %33 = vector.load %arg4[%c0_17, %c1, %c0_18, %c0_19] : memref<3x4x16x16xbf16, #tpu.memory_space<vmem>>, vector<1x1x16x16xbf16>
    %34 = vector.shape_cast %33 : vector<1x1x16x16xbf16> to vector<16x16xbf16>
    %cst_20 = arith.constant dense<0.000000e+00> : vector<16x30xf32>
    %35 = tpu.matmul %34, %25, %cst_20 {dimension_numbers = #tpu.dot_dimension_numbers<[1], [0], [0], [1], [0, 0, 1, 1], [], []>} : vector<16x16xbf16>, vector<16x30xbf16>, vector<16x30xf32> -> vector<16x30xf32>
    %c0_21 = arith.constant 0 : index
    %c1_22 = arith.constant 1 : index
    %c0_23 = arith.constant 0 : index
    %c0_24 = arith.constant 0 : index
    %36 = vector.load %arg5[%c0_21, %c1_22, %c0_23, %c0_24] : memref<3x4x16x1xf32, #tpu.memory_space<vmem>>, vector<1x1x16x1xf32>
    %37 = vector.shape_cast %36 : vector<1x1x16x1xf32> to vector<16x1xf32>
    %38 = vector.broadcast %37 : vector<16x1xf32> to vector<16x30xf32>
    %39 = arith.addf %35, %38 : vector<16x30xf32>
    %c0_25 = arith.constant 0 : index
    %c2 = arith.constant 2 : index
    %c0_26 = arith.constant 0 : index
    %c0_27 = arith.constant 0 : index
    %40 = vector.load %arg4[%c0_25, %c2, %c0_26, %c0_27] : memref<3x4x16x16xbf16, #tpu.memory_space<vmem>>, vector<1x1x16x16xbf16>
    %41 = vector.shape_cast %40 : vector<1x1x16x16xbf16> to vector<16x16xbf16>
    %cst_28 = arith.constant dense<0.000000e+00> : vector<16x30xf32>
    %42 = tpu.matmul %41, %25, %cst_28 {dimension_numbers = #tpu.dot_dimension_numbers<[1], [0], [0], [1], [0, 0, 1, 1], [], []>} : vector<16x16xbf16>, vector<16x30xbf16>, vector<16x30xf32> -> vector<16x30xf32>
    %c0_29 = arith.constant 0 : index
    %c2_30 = arith.constant 2 : index
    %c0_31 = arith.constant 0 : index
    %c0_32 = arith.constant 0 : index
    %43 = vector.load %arg5[%c0_29, %c2_30, %c0_31, %c0_32] : memref<3x4x16x1xf32, #tpu.memory_space<vmem>>, vector<1x1x16x1xf32>
    %44 = vector.shape_cast %43 : vector<1x1x16x1xf32> to vector<16x1xf32>
    %45 = vector.broadcast %44 : vector<16x1xf32> to vector<16x30xf32>
    %46 = arith.addf %42, %45 : vector<16x30xf32>
    %47 = tpu.transpose %32, [1, 0] : vector<16x30xf32> -> vector<30x16xf32>
    %48 = arith.truncf %47 : vector<30x16xf32> to vector<30x16xbf16>
    %49 = arith.truncf %39 : vector<16x30xf32> to vector<16x30xbf16>
    %cst_33 = arith.constant 0.000000e+00 : f32
    %50 = vector.broadcast %cst_33 : f32 to vector<1x30xf32>
    %cst_34 = arith.constant dense<0.000000e+00> : vector<30x30xf32>
    %51 = tpu.matmul %48, %49, %cst_34 {dimension_numbers = #tpu.dot_dimension_numbers<[1], [0], [0], [1], [0, 0, 1, 1], [], []>} : vector<30x16xbf16>, vector<16x30xbf16>, vector<30x30xf32> -> vector<30x30xf32>
    %52 = arith.negf %51 : vector<30x30xf32>
    %53 = math.exp %52 : vector<30x30xf32>
    %cst_35 = arith.constant 1.000000e+00 : f32
    %54 = vector.broadcast %cst_35 : f32 to vector<30x30xf32>
    %55 = arith.addf %54, %53 : vector<30x30xf32>
    %56 = arith.divf %54, %55 : vector<30x30xf32>
    %cst_36 = arith.constant dense<0.000000e+00> : vector<30xf32>
    %57 = vector.multi_reduction <add>, %56, %cst_36 [0] : vector<30x30xf32> to vector<30xf32>
    %58 = vector.shape_cast %57 : vector<30xf32> to vector<1x30xf32>
    %59 = arith.addf %50, %58 : vector<1x30xf32>
    %cst_37 = arith.constant 0.0333333351 : f32
    %60 = vector.broadcast %cst_37 : f32 to vector<1x30xf32>
    %61 = arith.mulf %59, %60 : vector<1x30xf32>
    %62 = vector.broadcast %61 : vector<1x30xf32> to vector<16x30xf32>
    %63 = arith.mulf %46, %62 : vector<16x30xf32>
    %cst_38 = arith.constant dense<0.000000e+00> : vector<16xf32>
    %64 = vector.multi_reduction <add>, %63, %cst_38 [1] : vector<16x30xf32> to vector<16xf32>
    %65 = vector.shape_cast %64 : vector<16xf32> to vector<16x1xf32>
    %c0_39 = arith.constant 0 : index
    %c3 = arith.constant 3 : index
    %c0_40 = arith.constant 0 : index
    %c0_41 = arith.constant 0 : index
    %66 = vector.load %arg4[%c0_39, %c3, %c0_40, %c0_41] : memref<3x4x16x16xbf16, #tpu.memory_space<vmem>>, vector<1x1x16x16xbf16>
    %67 = vector.shape_cast %66 : vector<1x1x16x16xbf16> to vector<16x16xbf16>
    %68 = arith.truncf %65 : vector<16x1xf32> to vector<16x1xbf16>
    %cst_42 = arith.constant dense<0.000000e+00> : vector<16x1xf32>
    %69 = tpu.matmul %67, %68, %cst_42 {dimension_numbers = #tpu.dot_dimension_numbers<[1], [0], [0], [1], [0, 0, 1, 1], [], []>} : vector<16x16xbf16>, vector<16x1xbf16>, vector<16x1xf32> -> vector<16x1xf32>
    %c0_43 = arith.constant 0 : index
    %c3_44 = arith.constant 3 : index
    %c0_45 = arith.constant 0 : index
    %c0_46 = arith.constant 0 : index
    %70 = vector.load %arg5[%c0_43, %c3_44, %c0_45, %c0_46] : memref<3x4x16x1xf32, #tpu.memory_space<vmem>>, vector<1x1x16x1xf32>
    %71 = vector.shape_cast %70 : vector<1x1x16x1xf32> to vector<16x1xf32>
    %72 = arith.addf %69, %71 : vector<16x1xf32>
    %cst_47 = arith.constant 0.000000e+00 : f32
    %73 = vector.broadcast %cst_47 : f32 to vector<16x1xf32>
    %74 = arith.maximumf %72, %73 : vector<16x1xf32>
    %c1_48 = arith.constant 1 : index
    %c0_49 = arith.constant 0 : index
    %c0_50 = arith.constant 0 : index
    %75 = vector.load %arg2[%c1_48, %c0_49, %c0_50] : memref<3x16x10xf32, #tpu.memory_space<vmem>>, vector<1x16x10xf32>
    %76 = vector.shape_cast %75 : vector<1x16x10xf32> to vector<16x10xf32>
    %cst_51 = arith.constant 0.000000e+00 : f32
    %77 = vector.broadcast %cst_51 : f32 to vector<16x28xf32>
    %78 = vector.extract_strided_slice %76 {offsets = [0, 0], sizes = [16, 1], strides = [1, 1]} : vector<16x10xf32> to vector<16x1xf32>
    %79 = vector.extract_strided_slice %2 {offsets = [0, 0], sizes = [16, 28], strides = [1, 1]} : vector<16x32xf32> to vector<16x28xf32>
    %80 = vector.broadcast %78 : vector<16x1xf32> to vector<16x28xf32>
    %81 = arith.mulf %80, %79 : vector<16x28xf32>
    %82 = arith.addf %77, %81 : vector<16x28xf32>
    %83 = vector.extract_strided_slice %76 {offsets = [0, 1], sizes = [16, 1], strides = [1, 1]} : vector<16x10xf32> to vector<16x1xf32>
    %84 = vector.extract_strided_slice %2 {offsets = [0, 1], sizes = [16, 28], strides = [1, 1]} : vector<16x32xf32> to vector<16x28xf32>
    %85 = vector.broadcast %83 : vector<16x1xf32> to vector<16x28xf32>
    %86 = arith.mulf %85, %84 : vector<16x28xf32>
    %87 = arith.addf %82, %86 : vector<16x28xf32>
    %88 = vector.extract_strided_slice %76 {offsets = [0, 2], sizes = [16, 1], strides = [1, 1]} : vector<16x10xf32> to vector<16x1xf32>
    %89 = vector.extract_strided_slice %2 {offsets = [0, 2], sizes = [16, 28], strides = [1, 1]} : vector<16x32xf32> to vector<16x28xf32>
    %90 = vector.broadcast %88 : vector<16x1xf32> to vector<16x28xf32>
    %91 = arith.mulf %90, %89 : vector<16x28xf32>
    %92 = arith.addf %87, %91 : vector<16x28xf32>
    %93 = vector.extract_strided_slice %76 {offsets = [0, 3], sizes = [16, 1], strides = [1, 1]} : vector<16x10xf32> to vector<16x1xf32>
    %94 = vector.extract_strided_slice %2 {offsets = [0, 3], sizes = [16, 28], strides = [1, 1]} : vector<16x32xf32> to vector<16x28xf32>
    %95 = vector.broadcast %93 : vector<16x1xf32> to vector<16x28xf32>
    %96 = arith.mulf %95, %94 : vector<16x28xf32>
    %97 = arith.addf %92, %96 : vector<16x28xf32>
    %98 = vector.extract_strided_slice %76 {offsets = [0, 4], sizes = [16, 1], strides = [1, 1]} : vector<16x10xf32> to vector<16x1xf32>
    %99 = vector.extract_strided_slice %2 {offsets = [0, 4], sizes = [16, 28], strides = [1, 1]} : vector<16x32xf32> to vector<16x28xf32>
    %100 = vector.broadcast %98 : vector<16x1xf32> to vector<16x28xf32>
    %101 = arith.mulf %100, %99 : vector<16x28xf32>
    %102 = arith.addf %97, %101 : vector<16x28xf32>
    %c1_52 = arith.constant 1 : index
    %c0_53 = arith.constant 0 : index
    %c0_54 = arith.constant 0 : index
    %103 = vector.load %arg3[%c1_52, %c0_53, %c0_54] : memref<3x16x1xf32, #tpu.memory_space<vmem>>, vector<1x16x1xf32>
    %104 = vector.shape_cast %103 : vector<1x16x1xf32> to vector<16x1xf32>
    %105 = vector.broadcast %104 : vector<16x1xf32> to vector<16x28xf32>
    %106 = arith.addf %102, %105 : vector<16x28xf32>
    %107 = arith.truncf %106 : vector<16x28xf32> to vector<16x28xbf16>
    %c1_55 = arith.constant 1 : index
    %c0_56 = arith.constant 0 : index
    %c0_57 = arith.constant 0 : index
    %c0_58 = arith.constant 0 : index
    %108 = vector.load %arg4[%c1_55, %c0_56, %c0_57, %c0_58] : memref<3x4x16x16xbf16, #tpu.memory_space<vmem>>, vector<1x1x16x16xbf16>
    %109 = vector.shape_cast %108 : vector<1x1x16x16xbf16> to vector<16x16xbf16>
    %cst_59 = arith.constant dense<0.000000e+00> : vector<16x28xf32>
    %110 = tpu.matmul %109, %107, %cst_59 {dimension_numbers = #tpu.dot_dimension_numbers<[1], [0], [0], [1], [0, 0, 1, 1], [], []>} : vector<16x16xbf16>, vector<16x28xbf16>, vector<16x28xf32> -> vector<16x28xf32>
    %c1_60 = arith.constant 1 : index
    %c0_61 = arith.constant 0 : index
    %c0_62 = arith.constant 0 : index
    %c0_63 = arith.constant 0 : index
    %111 = vector.load %arg5[%c1_60, %c0_61, %c0_62, %c0_63] : memref<3x4x16x1xf32, #tpu.memory_space<vmem>>, vector<1x1x16x1xf32>
    %112 = vector.shape_cast %111 : vector<1x1x16x1xf32> to vector<16x1xf32>
    %113 = vector.broadcast %112 : vector<16x1xf32> to vector<16x28xf32>
    %114 = arith.addf %110, %113 : vector<16x28xf32>
    %c1_64 = arith.constant 1 : index
    %c1_65 = arith.constant 1 : index
    %c0_66 = arith.constant 0 : index
    %c0_67 = arith.constant 0 : index
    %115 = vector.load %arg4[%c1_64, %c1_65, %c0_66, %c0_67] : memref<3x4x16x16xbf16, #tpu.memory_space<vmem>>, vector<1x1x16x16xbf16>
    %116 = vector.shape_cast %115 : vector<1x1x16x16xbf16> to vector<16x16xbf16>
    %cst_68 = arith.constant dense<0.000000e+00> : vector<16x28xf32>
    %117 = tpu.matmul %116, %107, %cst_68 {dimension_numbers = #tpu.dot_dimension_numbers<[1], [0], [0], [1], [0, 0, 1, 1], [], []>} : vector<16x16xbf16>, vector<16x28xbf16>, vector<16x28xf32> -> vector<16x28xf32>
    %c1_69 = arith.constant 1 : index
    %c1_70 = arith.constant 1 : index
    %c0_71 = arith.constant 0 : index
    %c0_72 = arith.constant 0 : index
    %118 = vector.load %arg5[%c1_69, %c1_70, %c0_71, %c0_72] : memref<3x4x16x1xf32, #tpu.memory_space<vmem>>, vector<1x1x16x1xf32>
    %119 = vector.shape_cast %118 : vector<1x1x16x1xf32> to vector<16x1xf32>
    %120 = vector.broadcast %119 : vector<16x1xf32> to vector<16x28xf32>
    %121 = arith.addf %117, %120 : vector<16x28xf32>
    %c1_73 = arith.constant 1 : index
    %c2_74 = arith.constant 2 : index
    %c0_75 = arith.constant 0 : index
    %c0_76 = arith.constant 0 : index
    %122 = vector.load %arg4[%c1_73, %c2_74, %c0_75, %c0_76] : memref<3x4x16x16xbf16, #tpu.memory_space<vmem>>, vector<1x1x16x16xbf16>
    %123 = vector.shape_cast %122 : vector<1x1x16x16xbf16> to vector<16x16xbf16>
    %cst_77 = arith.constant dense<0.000000e+00> : vector<16x28xf32>
    %124 = tpu.matmul %123, %107, %cst_77 {dimension_numbers = #tpu.dot_dimension_numbers<[1], [0], [0], [1], [0, 0, 1, 1], [], []>} : vector<16x16xbf16>, vector<16x28xbf16>, vector<16x28xf32> -> vector<16x28xf32>
    %c1_78 = arith.constant 1 : index
    %c2_79 = arith.constant 2 : index
    %c0_80 = arith.constant 0 : index
    %c0_81 = arith.constant 0 : index
    %125 = vector.load %arg5[%c1_78, %c2_79, %c0_80, %c0_81] : memref<3x4x16x1xf32, #tpu.memory_space<vmem>>, vector<1x1x16x1xf32>
    %126 = vector.shape_cast %125 : vector<1x1x16x1xf32> to vector<16x1xf32>
    %127 = vector.broadcast %126 : vector<16x1xf32> to vector<16x28xf32>
    %128 = arith.addf %124, %127 : vector<16x28xf32>
    %129 = tpu.transpose %114, [1, 0] : vector<16x28xf32> -> vector<28x16xf32>
    %130 = arith.truncf %129 : vector<28x16xf32> to vector<28x16xbf16>
    %131 = arith.truncf %121 : vector<16x28xf32> to vector<16x28xbf16>
    %cst_82 = arith.constant 0.000000e+00 : f32
    %132 = vector.broadcast %cst_82 : f32 to vector<1x28xf32>
    %cst_83 = arith.constant dense<0.000000e+00> : vector<28x28xf32>
    %133 = tpu.matmul %130, %131, %cst_83 {dimension_numbers = #tpu.dot_dimension_numbers<[1], [0], [0], [1], [0, 0, 1, 1], [], []>} : vector<28x16xbf16>, vector<16x28xbf16>, vector<28x28xf32> -> vector<28x28xf32>
    %134 = arith.negf %133 : vector<28x28xf32>
    %135 = math.exp %134 : vector<28x28xf32>
    %cst_84 = arith.constant 1.000000e+00 : f32
    %136 = vector.broadcast %cst_84 : f32 to vector<28x28xf32>
    %137 = arith.addf %136, %135 : vector<28x28xf32>
    %138 = arith.divf %136, %137 : vector<28x28xf32>
    %cst_85 = arith.constant dense<0.000000e+00> : vector<28xf32>
    %139 = vector.multi_reduction <add>, %138, %cst_85 [0] : vector<28x28xf32> to vector<28xf32>
    %140 = vector.shape_cast %139 : vector<28xf32> to vector<1x28xf32>
    %141 = arith.addf %132, %140 : vector<1x28xf32>
    %cst_86 = arith.constant 0.0357142873 : f32
    %142 = vector.broadcast %cst_86 : f32 to vector<1x28xf32>
    %143 = arith.mulf %141, %142 : vector<1x28xf32>
    %144 = vector.broadcast %143 : vector<1x28xf32> to vector<16x28xf32>
    %145 = arith.mulf %128, %144 : vector<16x28xf32>
    %cst_87 = arith.constant dense<0.000000e+00> : vector<16xf32>
    %146 = vector.multi_reduction <add>, %145, %cst_87 [1] : vector<16x28xf32> to vector<16xf32>
    %147 = vector.shape_cast %146 : vector<16xf32> to vector<16x1xf32>
    %c1_88 = arith.constant 1 : index
    %c3_89 = arith.constant 3 : index
    %c0_90 = arith.constant 0 : index
    %c0_91 = arith.constant 0 : index
    %148 = vector.load %arg4[%c1_88, %c3_89, %c0_90, %c0_91] : memref<3x4x16x16xbf16, #tpu.memory_space<vmem>>, vector<1x1x16x16xbf16>
    %149 = vector.shape_cast %148 : vector<1x1x16x16xbf16> to vector<16x16xbf16>
    %150 = arith.truncf %147 : vector<16x1xf32> to vector<16x1xbf16>
    %cst_92 = arith.constant dense<0.000000e+00> : vector<16x1xf32>
    %151 = tpu.matmul %149, %150, %cst_92 {dimension_numbers = #tpu.dot_dimension_numbers<[1], [0], [0], [1], [0, 0, 1, 1], [], []>} : vector<16x16xbf16>, vector<16x1xbf16>, vector<16x1xf32> -> vector<16x1xf32>
    %c1_93 = arith.constant 1 : index
    %c3_94 = arith.constant 3 : index
    %c0_95 = arith.constant 0 : index
    %c0_96 = arith.constant 0 : index
    %152 = vector.load %arg5[%c1_93, %c3_94, %c0_95, %c0_96] : memref<3x4x16x1xf32, #tpu.memory_space<vmem>>, vector<1x1x16x1xf32>
    %153 = vector.shape_cast %152 : vector<1x1x16x1xf32> to vector<16x1xf32>
    %154 = arith.addf %151, %153 : vector<16x1xf32>
    %cst_97 = arith.constant 0.000000e+00 : f32
    %155 = vector.broadcast %cst_97 : f32 to vector<16x1xf32>
    %156 = arith.maximumf %154, %155 : vector<16x1xf32>
    %c2_98 = arith.constant 2 : index
    %c0_99 = arith.constant 0 : index
    %c0_100 = arith.constant 0 : index
    %157 = vector.load %arg2[%c2_98, %c0_99, %c0_100] : memref<3x16x10xf32, #tpu.memory_space<vmem>>, vector<1x16x10xf32>
    %158 = vector.shape_cast %157 : vector<1x16x10xf32> to vector<16x10xf32>
    %cst_101 = arith.constant 0.000000e+00 : f32
    %159 = vector.broadcast %cst_101 : f32 to vector<16x23xf32>
    %160 = vector.extract_strided_slice %158 {offsets = [0, 0], sizes = [16, 1], strides = [1, 1]} : vector<16x10xf32> to vector<16x1xf32>
    %161 = vector.extract_strided_slice %2 {offsets = [0, 0], sizes = [16, 23], strides = [1, 1]} : vector<16x32xf32> to vector<16x23xf32>
    %162 = vector.broadcast %160 : vector<16x1xf32> to vector<16x23xf32>
    %163 = arith.mulf %162, %161 : vector<16x23xf32>
    %164 = arith.addf %159, %163 : vector<16x23xf32>
    %165 = vector.extract_strided_slice %158 {offsets = [0, 1], sizes = [16, 1], strides = [1, 1]} : vector<16x10xf32> to vector<16x1xf32>
    %166 = vector.extract_strided_slice %2 {offsets = [0, 1], sizes = [16, 23], strides = [1, 1]} : vector<16x32xf32> to vector<16x23xf32>
    %167 = vector.broadcast %165 : vector<16x1xf32> to vector<16x23xf32>
    %168 = arith.mulf %167, %166 : vector<16x23xf32>
    %169 = arith.addf %164, %168 : vector<16x23xf32>
    %170 = vector.extract_strided_slice %158 {offsets = [0, 2], sizes = [16, 1], strides = [1, 1]} : vector<16x10xf32> to vector<16x1xf32>
    %171 = vector.extract_strided_slice %2 {offsets = [0, 2], sizes = [16, 23], strides = [1, 1]} : vector<16x32xf32> to vector<16x23xf32>
    %172 = vector.broadcast %170 : vector<16x1xf32> to vector<16x23xf32>
    %173 = arith.mulf %172, %171 : vector<16x23xf32>
    %174 = arith.addf %169, %173 : vector<16x23xf32>
    %175 = vector.extract_strided_slice %158 {offsets = [0, 3], sizes = [16, 1], strides = [1, 1]} : vector<16x10xf32> to vector<16x1xf32>
    %176 = vector.extract_strided_slice %2 {offsets = [0, 3], sizes = [16, 23], strides = [1, 1]} : vector<16x32xf32> to vector<16x23xf32>
    %177 = vector.broadcast %175 : vector<16x1xf32> to vector<16x23xf32>
    %178 = arith.mulf %177, %176 : vector<16x23xf32>
    %179 = arith.addf %174, %178 : vector<16x23xf32>
    %180 = vector.extract_strided_slice %158 {offsets = [0, 4], sizes = [16, 1], strides = [1, 1]} : vector<16x10xf32> to vector<16x1xf32>
    %181 = vector.extract_strided_slice %2 {offsets = [0, 4], sizes = [16, 23], strides = [1, 1]} : vector<16x32xf32> to vector<16x23xf32>
    %182 = vector.broadcast %180 : vector<16x1xf32> to vector<16x23xf32>
    %183 = arith.mulf %182, %181 : vector<16x23xf32>
    %184 = arith.addf %179, %183 : vector<16x23xf32>
    %185 = vector.extract_strided_slice %158 {offsets = [0, 5], sizes = [16, 1], strides = [1, 1]} : vector<16x10xf32> to vector<16x1xf32>
    %186 = vector.extract_strided_slice %2 {offsets = [0, 5], sizes = [16, 23], strides = [1, 1]} : vector<16x32xf32> to vector<16x23xf32>
    %187 = vector.broadcast %185 : vector<16x1xf32> to vector<16x23xf32>
    %188 = arith.mulf %187, %186 : vector<16x23xf32>
    %189 = arith.addf %184, %188 : vector<16x23xf32>
    %190 = vector.extract_strided_slice %158 {offsets = [0, 6], sizes = [16, 1], strides = [1, 1]} : vector<16x10xf32> to vector<16x1xf32>
    %191 = vector.extract_strided_slice %2 {offsets = [0, 6], sizes = [16, 23], strides = [1, 1]} : vector<16x32xf32> to vector<16x23xf32>
    %192 = vector.broadcast %190 : vector<16x1xf32> to vector<16x23xf32>
    %193 = arith.mulf %192, %191 : vector<16x23xf32>
    %194 = arith.addf %189, %193 : vector<16x23xf32>
    %195 = vector.extract_strided_slice %158 {offsets = [0, 7], sizes = [16, 1], strides = [1, 1]} : vector<16x10xf32> to vector<16x1xf32>
    %196 = vector.extract_strided_slice %2 {offsets = [0, 7], sizes = [16, 23], strides = [1, 1]} : vector<16x32xf32> to vector<16x23xf32>
    %197 = vector.broadcast %195 : vector<16x1xf32> to vector<16x23xf32>
    %198 = arith.mulf %197, %196 : vector<16x23xf32>
    %199 = arith.addf %194, %198 : vector<16x23xf32>
    %200 = vector.extract_strided_slice %158 {offsets = [0, 8], sizes = [16, 1], strides = [1, 1]} : vector<16x10xf32> to vector<16x1xf32>
    %201 = vector.extract_strided_slice %2 {offsets = [0, 8], sizes = [16, 23], strides = [1, 1]} : vector<16x32xf32> to vector<16x23xf32>
    %202 = vector.broadcast %200 : vector<16x1xf32> to vector<16x23xf32>
    %203 = arith.mulf %202, %201 : vector<16x23xf32>
    %204 = arith.addf %199, %203 : vector<16x23xf32>
    %205 = vector.extract_strided_slice %158 {offsets = [0, 9], sizes = [16, 1], strides = [1, 1]} : vector<16x10xf32> to vector<16x1xf32>
    %206 = vector.extract_strided_slice %2 {offsets = [0, 9], sizes = [16, 23], strides = [1, 1]} : vector<16x32xf32> to vector<16x23xf32>
    %207 = vector.broadcast %205 : vector<16x1xf32> to vector<16x23xf32>
    %208 = arith.mulf %207, %206 : vector<16x23xf32>
    %209 = arith.addf %204, %208 : vector<16x23xf32>
    %c2_102 = arith.constant 2 : index
    %c0_103 = arith.constant 0 : index
    %c0_104 = arith.constant 0 : index
    %210 = vector.load %arg3[%c2_102, %c0_103, %c0_104] : memref<3x16x1xf32, #tpu.memory_space<vmem>>, vector<1x16x1xf32>
    %211 = vector.shape_cast %210 : vector<1x16x1xf32> to vector<16x1xf32>
    %212 = vector.broadcast %211 : vector<16x1xf32> to vector<16x23xf32>
    %213 = arith.addf %209, %212 : vector<16x23xf32>
    %214 = arith.truncf %213 : vector<16x23xf32> to vector<16x23xbf16>
    %c2_105 = arith.constant 2 : index
    %c0_106 = arith.constant 0 : index
    %c0_107 = arith.constant 0 : index
    %c0_108 = arith.constant 0 : index
    %215 = vector.load %arg4[%c2_105, %c0_106, %c0_107, %c0_108] : memref<3x4x16x16xbf16, #tpu.memory_space<vmem>>, vector<1x1x16x16xbf16>
    %216 = vector.shape_cast %215 : vector<1x1x16x16xbf16> to vector<16x16xbf16>
    %cst_109 = arith.constant dense<0.000000e+00> : vector<16x23xf32>
    %217 = tpu.matmul %216, %214, %cst_109 {dimension_numbers = #tpu.dot_dimension_numbers<[1], [0], [0], [1], [0, 0, 1, 1], [], []>} : vector<16x16xbf16>, vector<16x23xbf16>, vector<16x23xf32> -> vector<16x23xf32>
    %c2_110 = arith.constant 2 : index
    %c0_111 = arith.constant 0 : index
    %c0_112 = arith.constant 0 : index
    %c0_113 = arith.constant 0 : index
    %218 = vector.load %arg5[%c2_110, %c0_111, %c0_112, %c0_113] : memref<3x4x16x1xf32, #tpu.memory_space<vmem>>, vector<1x1x16x1xf32>
    %219 = vector.shape_cast %218 : vector<1x1x16x1xf32> to vector<16x1xf32>
    %220 = vector.broadcast %219 : vector<16x1xf32> to vector<16x23xf32>
    %221 = arith.addf %217, %220 : vector<16x23xf32>
    %c2_114 = arith.constant 2 : index
    %c1_115 = arith.constant 1 : index
    %c0_116 = arith.constant 0 : index
    %c0_117 = arith.constant 0 : index
    %222 = vector.load %arg4[%c2_114, %c1_115, %c0_116, %c0_117] : memref<3x4x16x16xbf16, #tpu.memory_space<vmem>>, vector<1x1x16x16xbf16>
    %223 = vector.shape_cast %222 : vector<1x1x16x16xbf16> to vector<16x16xbf16>
    %cst_118 = arith.constant dense<0.000000e+00> : vector<16x23xf32>
    %224 = tpu.matmul %223, %214, %cst_118 {dimension_numbers = #tpu.dot_dimension_numbers<[1], [0], [0], [1], [0, 0, 1, 1], [], []>} : vector<16x16xbf16>, vector<16x23xbf16>, vector<16x23xf32> -> vector<16x23xf32>
    %c2_119 = arith.constant 2 : index
    %c1_120 = arith.constant 1 : index
    %c0_121 = arith.constant 0 : index
    %c0_122 = arith.constant 0 : index
    %225 = vector.load %arg5[%c2_119, %c1_120, %c0_121, %c0_122] : memref<3x4x16x1xf32, #tpu.memory_space<vmem>>, vector<1x1x16x1xf32>
    %226 = vector.shape_cast %225 : vector<1x1x16x1xf32> to vector<16x1xf32>
    %227 = vector.broadcast %226 : vector<16x1xf32> to vector<16x23xf32>
    %228 = arith.addf %224, %227 : vector<16x23xf32>
    %c2_123 = arith.constant 2 : index
    %c2_124 = arith.constant 2 : index
    %c0_125 = arith.constant 0 : index
    %c0_126 = arith.constant 0 : index
    %229 = vector.load %arg4[%c2_123, %c2_124, %c0_125, %c0_126] : memref<3x4x16x16xbf16, #tpu.memory_space<vmem>>, vector<1x1x16x16xbf16>
    %230 = vector.shape_cast %229 : vector<1x1x16x16xbf16> to vector<16x16xbf16>
    %cst_127 = arith.constant dense<0.000000e+00> : vector<16x23xf32>
    %231 = tpu.matmul %230, %214, %cst_127 {dimension_numbers = #tpu.dot_dimension_numbers<[1], [0], [0], [1], [0, 0, 1, 1], [], []>} : vector<16x16xbf16>, vector<16x23xbf16>, vector<16x23xf32> -> vector<16x23xf32>
    %c2_128 = arith.constant 2 : index
    %c2_129 = arith.constant 2 : index
    %c0_130 = arith.constant 0 : index
    %c0_131 = arith.constant 0 : index
    %232 = vector.load %arg5[%c2_128, %c2_129, %c0_130, %c0_131] : memref<3x4x16x1xf32, #tpu.memory_space<vmem>>, vector<1x1x16x1xf32>
    %233 = vector.shape_cast %232 : vector<1x1x16x1xf32> to vector<16x1xf32>
    %234 = vector.broadcast %233 : vector<16x1xf32> to vector<16x23xf32>
    %235 = arith.addf %231, %234 : vector<16x23xf32>
    %236 = tpu.transpose %221, [1, 0] : vector<16x23xf32> -> vector<23x16xf32>
    %237 = arith.truncf %236 : vector<23x16xf32> to vector<23x16xbf16>
    %238 = arith.truncf %228 : vector<16x23xf32> to vector<16x23xbf16>
    %cst_132 = arith.constant 0.000000e+00 : f32
    %239 = vector.broadcast %cst_132 : f32 to vector<1x23xf32>
    %cst_133 = arith.constant dense<0.000000e+00> : vector<23x23xf32>
    %240 = tpu.matmul %237, %238, %cst_133 {dimension_numbers = #tpu.dot_dimension_numbers<[1], [0], [0], [1], [0, 0, 1, 1], [], []>} : vector<23x16xbf16>, vector<16x23xbf16>, vector<23x23xf32> -> vector<23x23xf32>
    %241 = arith.negf %240 : vector<23x23xf32>
    %242 = math.exp %241 : vector<23x23xf32>
    %cst_134 = arith.constant 1.000000e+00 : f32
    %243 = vector.broadcast %cst_134 : f32 to vector<23x23xf32>
    %244 = arith.addf %243, %242 : vector<23x23xf32>
    %245 = arith.divf %243, %244 : vector<23x23xf32>
    %cst_135 = arith.constant dense<0.000000e+00> : vector<23xf32>
    %246 = vector.multi_reduction <add>, %245, %cst_135 [0] : vector<23x23xf32> to vector<23xf32>
    %247 = vector.shape_cast %246 : vector<23xf32> to vector<1x23xf32>
    %248 = arith.addf %239, %247 : vector<1x23xf32>
    %cst_136 = arith.constant 0.0434782617 : f32
    %249 = vector.broadcast %cst_136 : f32 to vector<1x23xf32>
    %250 = arith.mulf %248, %249 : vector<1x23xf32>
    %251 = vector.broadcast %250 : vector<1x23xf32> to vector<16x23xf32>
    %252 = arith.mulf %235, %251 : vector<16x23xf32>
    %cst_137 = arith.constant dense<0.000000e+00> : vector<16xf32>
    %253 = vector.multi_reduction <add>, %252, %cst_137 [1] : vector<16x23xf32> to vector<16xf32>
    %254 = vector.shape_cast %253 : vector<16xf32> to vector<16x1xf32>
    %c2_138 = arith.constant 2 : index
    %c3_139 = arith.constant 3 : index
    %c0_140 = arith.constant 0 : index
    %c0_141 = arith.constant 0 : index
    %255 = vector.load %arg4[%c2_138, %c3_139, %c0_140, %c0_141] : memref<3x4x16x16xbf16, #tpu.memory_space<vmem>>, vector<1x1x16x16xbf16>
    %256 = vector.shape_cast %255 : vector<1x1x16x16xbf16> to vector<16x16xbf16>
    %257 = arith.truncf %254 : vector<16x1xf32> to vector<16x1xbf16>
    %cst_142 = arith.constant dense<0.000000e+00> : vector<16x1xf32>
    %258 = tpu.matmul %256, %257, %cst_142 {dimension_numbers = #tpu.dot_dimension_numbers<[1], [0], [0], [1], [0, 0, 1, 1], [], []>} : vector<16x16xbf16>, vector<16x1xbf16>, vector<16x1xf32> -> vector<16x1xf32>
    %c2_143 = arith.constant 2 : index
    %c3_144 = arith.constant 3 : index
    %c0_145 = arith.constant 0 : index
    %c0_146 = arith.constant 0 : index
    %259 = vector.load %arg5[%c2_143, %c3_144, %c0_145, %c0_146] : memref<3x4x16x1xf32, #tpu.memory_space<vmem>>, vector<1x1x16x1xf32>
    %260 = vector.shape_cast %259 : vector<1x1x16x1xf32> to vector<16x1xf32>
    %261 = arith.addf %258, %260 : vector<16x1xf32>
    %cst_147 = arith.constant 0.000000e+00 : f32
    %262 = vector.broadcast %cst_147 : f32 to vector<16x1xf32>
    %263 = arith.maximumf %261, %262 : vector<16x1xf32>
    %c0_148 = arith.constant 0 : index
    %c0_149 = arith.constant 0 : index
    %264 = memref.load %arg6[%c0_148, %c0_149] : memref<1x3xf32, #tpu.memory_space<smem>>
    %265 = vector.broadcast %264 : f32 to vector<16x1xf32>
    %266 = arith.mulf %74, %265 : vector<16x1xf32>
    %c0_150 = arith.constant 0 : index
    %c1_151 = arith.constant 1 : index
    %267 = memref.load %arg6[%c0_150, %c1_151] : memref<1x3xf32, #tpu.memory_space<smem>>
    %268 = vector.broadcast %267 : f32 to vector<16x1xf32>
    %269 = arith.mulf %156, %268 : vector<16x1xf32>
    %270 = arith.addf %266, %269 : vector<16x1xf32>
    %c0_152 = arith.constant 0 : index
    %c2_153 = arith.constant 2 : index
    %271 = memref.load %arg6[%c0_152, %c2_153] : memref<1x3xf32, #tpu.memory_space<smem>>
    %272 = vector.broadcast %271 : f32 to vector<16x1xf32>
    %273 = arith.mulf %263, %272 : vector<16x1xf32>
    %274 = arith.addf %270, %273 : vector<16x1xf32>
    %c0_154 = arith.constant 0 : index
    %c0_155 = arith.constant 0 : index
    %275 = memref.load %arg7[%c0_154, %c0_155] : memref<1x1xf32, #tpu.memory_space<smem>>
    %276 = vector.broadcast %275 : f32 to vector<16x1xf32>
    %277 = arith.addf %274, %276 : vector<16x1xf32>
    %c0_156 = arith.constant 0 : index
    %c0_157 = arith.constant 0 : index
    %278 = vector.load %arg8[%c0_156, %c0_157] : memref<8x16xf32, #tpu.memory_space<vmem>>, vector<8x16xf32>
    %cst_158 = arith.constant dense<0.000000e+00> : vector<8x1xf32>
    %279 = tpu.matmul %278, %277, %cst_158 {dimension_numbers = #tpu.dot_dimension_numbers<[1], [0], [0], [1], [0, 0, 1, 1], [], []>} : vector<8x16xf32>, vector<16x1xf32>, vector<8x1xf32> -> vector<8x1xf32>
    %c0_159 = arith.constant 0 : index
    %c0_160 = arith.constant 0 : index
    %280 = vector.load %arg9[%c0_159, %c0_160] : memref<8x1xf32, #tpu.memory_space<vmem>>, vector<8x1xf32>
    %281 = arith.addf %279, %280 : vector<8x1xf32>
    %cst_161 = arith.constant 0.000000e+00 : f32
    %282 = vector.broadcast %cst_161 : f32 to vector<8x1xf32>
    %283 = arith.maximumf %281, %282 : vector<8x1xf32>
    %c0_162 = arith.constant 0 : index
    %c0_163 = arith.constant 0 : index
    %284 = vector.load %arg10[%c0_162, %c0_163] : memref<16x8xf32, #tpu.memory_space<vmem>>, vector<16x8xf32>
    %cst_164 = arith.constant dense<0.000000e+00> : vector<16x1xf32>
    %285 = tpu.matmul %284, %283, %cst_164 {dimension_numbers = #tpu.dot_dimension_numbers<[1], [0], [0], [1], [0, 0, 1, 1], [], []>} : vector<16x8xf32>, vector<8x1xf32>, vector<16x1xf32> -> vector<16x1xf32>
    %c0_165 = arith.constant 0 : index
    %c0_166 = arith.constant 0 : index
    %286 = vector.load %arg11[%c0_165, %c0_166] : memref<16x1xf32, #tpu.memory_space<vmem>>, vector<16x1xf32>
    %287 = arith.addf %285, %286 : vector<16x1xf32>
    %288 = arith.negf %287 : vector<16x1xf32>
    %289 = math.exp %288 : vector<16x1xf32>
    %cst_167 = arith.constant 1.000000e+00 : f32
    %290 = vector.broadcast %cst_167 : f32 to vector<16x1xf32>
    %291 = arith.addf %290, %289 : vector<16x1xf32>
    %292 = arith.divf %290, %291 : vector<16x1xf32>
    %293 = vector.broadcast %292 : vector<16x1xf32> to vector<16x128xf32>
    %294 = arith.mulf %1, %293 : vector<16x128xf32>
    %c0_168 = arith.constant 0 : index
    %c0_169 = arith.constant 0 : index
    %c0_170 = arith.constant 0 : index
    %295 = vector.load %arg12[%c0_168, %c0_169, %c0_170] : memref<1x16x128xf32, #tpu.memory_space<vmem>>, vector<1x16x128xf32>
    %296 = vector.shape_cast %295 : vector<1x16x128xf32> to vector<16x128xf32>
    %297 = vector.shape_cast %294 : vector<16x128xf32> to vector<1x16x128xf32>
    tpu.vector_store %arg12[%c0_168, %c0_169, %c0_170], %297 {strides = array<i32>} : memref<1x16x128xf32, #tpu.memory_space<vmem>>, vector<1x16x128xf32>,
    return
  }
  func.func @transform_0(%arg0: i32) -> (i32, i32, i32) {
    %c0_i32 = arith.constant 0 : i32
    %c0_i32_0 = arith.constant 0 : i32
    %c0_i32_1 = arith.constant 0 : i32
    return %arg0, %c0_i32, %c0_i32_0 : i32, i32, i32
  }
  func.func @transform_1(%arg0: i32) -> (i32, i32, i32) {
    %c0_i32 = arith.constant 0 : i32
    %c0_i32_0 = arith.constant 0 : i32
    %c0_i32_1 = arith.constant 0 : i32
    %c0_i32_2 = arith.constant 0 : i32
    return %c0_i32, %c0_i32_0, %c0_i32_1 : i32, i32, i32
  }
  func.func @transform_2(%arg0: i32) -> (i32, i32, i32) {
    %c0_i32 = arith.constant 0 : i32
    %c0_i32_0 = arith.constant 0 : i32
    %c0_i32_1 = arith.constant 0 : i32
    %c0_i32_2 = arith.constant 0 : i32
    return %c0_i32, %c0_i32_0, %c0_i32_1 : i32, i32, i32
  }
  func.func @transform_3(%arg0: i32) -> (i32, i32, i32, i32) {
    %c0_i32 = arith.constant 0 : i32
    %c0_i32_0 = arith.constant 0 : i32
    %c0_i32_1 = arith.constant 0 : i32
    %c0_i32_2 = arith.constant 0 : i32
    %c0_i32_3 = arith.constant 0 : i32
    return %c0_i32, %c0_i32_0, %c0_i32_1, %c0_i32_2 : i32, i32, i32, i32
  }
  func.func @transform_4(%arg0: i32) -> (i32, i32, i32, i32) {
    %c0_i32 = arith.constant 0 : i32
    %c0_i32_0 = arith.constant 0 : i32
    %c0_i32_1 = arith.constant 0 : i32
    %c0_i32_2 = arith.constant 0 : i32
    %c0_i32_3 = arith.constant 0 : i32
    return %c0_i32, %c0_i32_0, %c0_i32_1, %c0_i32_2 : i32, i32, i32, i32
  }
  func.func @transform_5(%arg0: i32) -> (i32, i32) {
    %c0_i32 = arith.constant 0 : i32
    %c0_i32_0 = arith.constant 0 : i32
    %c0_i32_1 = arith.constant 0 : i32
    return %c0_i32, %c0_i32_0 : i32, i32
  }
  func.func @transform_6(%arg0: i32) -> (i32, i32) {
    %c0_i32 = arith.constant 0 : i32
    %c0_i32_0 = arith.constant 0 : i32
    %c0_i32_1 = arith.constant 0 : i32
    return %c0_i32, %c0_i32_0 : i32, i32
  }
  func.func @transform_7(%arg0: i32) -> (i32, i32) {
    %c0_i32 = arith.constant 0 : i32
    %c0_i32_0 = arith.constant 0 : i32
    %c0_i32_1 = arith.constant 0 : i32
    return %c0_i32, %c0_i32_0 : i32, i32
  }
  func.func @transform_8(%arg0: i32) -> (i32, i32) {
    %c0_i32 = arith.constant 0 : i32
    %c0_i32_0 = arith.constant 0 : i32
    %c0_i32_1 = arith.constant 0 : i32
    return %c0_i32, %c0_i32_0 : i32, i32
  }
  func.func @transform_9(%arg0: i32) -> (i32, i32) {
    %c0_i32 = arith.constant 0 : i32
    %c0_i32_0 = arith.constant 0 : i32
    %c0_i32_1 = arith.constant 0 : i32
    return %c0_i32, %c0_i32_0 : i32, i32
  }
  func.func @transform_10(%arg0: i32) -> (i32, i32) {
    %c0_i32 = arith.constant 0 : i32
    %c0_i32_0 = arith.constant 0 : i32
    %c0_i32_1 = arith.constant 0 : i32
    return %c0_i32, %c0_i32_0 : i32, i32
  }
  func.func @transform_11(%arg0: i32) -> (i32, i32, i32) {
    %c0_i32 = arith.constant 0 : i32
    %c0_i32_0 = arith.constant 0 : i32
    %c0_i32_1 = arith.constant 0 : i32
    return %arg0, %c0_i32, %c0_i32_0 : i32, i32, i32
  }
}

</mosaic_0001>

<bundles_post_ra>
// kernel: tpu_custom_call.1
= control target key start
LH: loop header
LB: loop body
LE: loop exit
PB: predicated region body
PF: predicated region fallthrough
CT: control target
= control target key end

     0   :  { %s2897_s0 = inlined_call_operand.vmem [shape: f32[4,16,128], index: 0, kind: input, shape index: {}]   ;;  %s2898_s1 = inlined_call_operand.vmem [shape: f32[3,16,10], index: 1, kind: input, shape index: {}]   ;;  %s2899_s2 = inlined_call_operand.vmem [shape: f32[3,16,1], index: 2, kind: input, shape index: {}]   ;;  %s2900_s3 = inlined_call_operand.vmem [shape: bf16[3,4,16,16], index: 3, kind: input, shape index: {}]   ;;  %s2901_s4 = inlined_call_operand.vmem [shape: f32[3,4,16,1], index: 4, kind: input, shape index: {}]   ;;  %s2902_s5 = inlined_call_operand.vmem [shape: f32[1,3], index: 5, kind: input, shape index: {}]   ;;  %s2903_s6 = inlined_call_operand.<no memory space> [shape: f32[1,1], index: 6, kind: input, shape index: {}]   ;;  %s2904_s7 = inlined_call_operand.vmem [shape: f32[8,16], index: 7, kind: input, shape index: {}]   ;;  %s2905_s8 = inlined_call_operand.vmem [shape: f32[8,1], index: 8, kind: input, shape index: {}]   ;;  %s2906_s9 = inlined_call_operand.vmem [shape: f32[16,8], index: 9, kind: input, shape index: {}]   ;;  %s2907_s10 = inlined_call_operand.vmem [shape: f32[16,1], index: 10, kind: input, shape index: {}]   ;;  %s2908_s11 = inlined_call_operand.hbm [shape: f32[4,16,128], index: 11, kind: output, shape index: {}]  }
   0x1   :  { %2913 = sst [smem:[#allocation9_spill]] %s2897_s0 }
   0x2   :  { %2914 = sst [smem:[#allocation10_spill]] %s2898_s1 }
   0x3   :  { %16 = sst [smem:[#allocation2]] %s2903_s6 }
   0x4   :  { %17 = vsyncpa [#allocation5], 0 }
   0x5   :  { %18 = vsyncpa [#allocation4], 0 }
   0x6   :  { %20 = vsyncpa [#allocation4 + $0x1], 0  ;;  %s2408_s19 = smov 0   ;;  %s2410_s20 = smov 0  }
   0x7   :  { %s2412_s21 = smov 0   ;;  %s2414_s22 = smov 0  }
   0x8 LB: > { %s2429_s6 = sadd.s32 4294967295, %s2321_s22   ;;  %s1917_s23 = sadd.s32 4294967294, %s2321_s22   ;;  %s2321_s22 = sphi %s2414_s22, %s2936_s22   ;;  %s2317_s21 = sphi %s2412_s21, %s2935_s21   ;;  %s2313_s20 = sphi %s2410_s20, %s2934_s20   ;;  %s2309_s19 = sphi %s2408_s19, %s2933_s19  }
   0x9   : > { %s2433_s24 = sadd.s32 1, %s2321_s22   ;;  %s269_s25 = sadd.s32 1, %s2317_s21 }
   0xa   : > { %s266_s26 = ssub.s32 %s2321_s22, %s2433_s24  ;;  %p279_p0 = scmp.ne.s32.totalorder %s2317_s21, %s2313_s20 }
   0xb   : > { %p267_p1 = scmp.eq.s32.totalorder %s266_s26, 0  ;;  %p280_p2 = scmp.eq.s32.totalorder %s2429_s6, 3 }
   0xc   : > { %p285_p3 = scmp.ne.s32.totalorder %s2313_s20, %s2309_s19  ;;  %p286_p4 = scmp.eq.s32.totalorder %s1917_s23, 3 }
   0xd   : > { %s2444_s27 = scalar_select %p267_p1, %s2317_s21, %s269_s25  }
   0xe   : > { %p2446_p5 = por %p280_p2, %p279_p0  ;;  %p2450_p6 = por %p286_p4, %p285_p3 }
   0xf   : > { %p1918_p7 = scmp.ge.s32.totalorder %s2321_s22, 1  ;;  %p293_p8 = scmp.lt.s32.totalorder %s2321_s22, 5 }
  0x10   : > { %p2095_p9 = scmp.eq.s32.totalorder %s2429_s6, 0  ;;  %s317_s13 = sshll.u32 %s2902_s5, 4  ;;  %s318_s13 = int_to_ptr.vmem [resolvable:$true] %s317_s13 }
  0x11   : > { %p294_p10 = pnand %p1918_p7, %p293_p8  ;;  %s2323_s14 = smov [#allocation3]  }
  0x13   : > { %p2087_p11 = pneg %p294_p10  ;;  %353 = sbr.rel (%p294_p10) target bundleno = 2124 (0x84c), region = 64 }
  0x15   : > { %p2088_p12 = pnand %p2095_p9, %p2087_p11 }
  0x17   : > { %2090 = dma.vmem_to_smem (!%p2088_p12), %s318_s13, 16, %s2323_s14, [#allocation5]  }
  0x18   : > { %2300 = dma.done.wait (%p2095_p9), [#allocation5], 16  }
  0x19   : > { %2302 = vsyncadd (%p2095_p9), [#allocation5], 4294967280 }
  0x1a   : > { %360 = sfence }
  0x1b   : > { %s2917_s1 = sld [smem:[#allocation10_spill]]  ;;  %v2324_v1 = vmov 2   ;;  %v2325_v2 = vmov 1   ;;  %v2326_v3 = vmov 0   ;;  %p395_p13 = scmp.lt.s32.totalorder %s2429_s6, 3  ;;  %v460_v13 = vld [vmem:[%s2899_s2 + $0x8] sm:$0xff] }
  0x1c   : > { %2154 = vset.pattern.permute.xlu1 %v2324_v1  ;;  %2153 = vset.pattern.permute.xlu0 %v2325_v2  ;;  %s2918_s0 = sld [smem:[#allocation9_spill]]  ;;  %s2909_s13 = smov 126   ;;  %v459_v16 = vld [vmem:[%s2899_s2] sm:$0xff]  ;;  %v1933_v17 = vld [vmem:[%s2901_s4 + $0x10] sm:$0xff]  ;;  %v477_v19 = vld [vmem:[%s2901_s4 + $0x8] sm:$0xff]  ;;  %v2329_v21 = vmov 4  }
  0x1d   : > { %2155 = vset.pattern.permute.xlu2 %v2326_v3  ;;  %s396_s23 = scalar_select %p395_p13, %s2429_s6, 3  ;;  %v1934_v22 = vld [vmem:[%s2901_s4 + $0x18] sm:$0xff]  ;;  %v2330_v23 = vmov 3   ;;  %v476_v27 = vld [vmem:[%s2901_s4] sm:$0xff]  ;;  %v2069_v49 = vld [vmem:[%s2900_s3 + $0x8] sm:$0xff]  ;;  %vm493_vm0 = vcmask 130048  }
  0x1e   : > { %s2911_s14 = smov 127   ;;  %v2068_v48 = vld [vmem:[%s2900_s3] sm:$0xff]  ;;  %s2920_s16 = smov 126   ;;  %v1966_v58 = vld [vmem:[%s2899_s2 + $0x10] sm:$0xff]  ;;  %vm723_vm13 = vcmask 244736  }
  0x1f   : > { %s2067_s25 = sshll.u32 %s396_s23, 4  ;;  %s2919_s23 = smov 127   ;;  %v1970_v60 = vld [vmem:[%s2901_s4 + $0x40] sm:$0xff] }
  0x20   : > { %s2331_s17 = smov 125   ;;  %s1695_s15 = sld [smem:[#allocation3]] }
  0x21   : > { %v403_v0 = vld [vmem:[%s2917_s1] sm:$0xff]  ;;  %v404_v4 = vld [vmem:[%s2917_s1 + $0x8] sm:$0xff]  ;;  %v1965_v18 = vld [vmem:[%s2917_s1 + $0x18] sm:$0xff] }
  0x22   : > { %440 = vperm.xlu1 %2154, %v403_v0   ;;  %420 = vperm.xlu0 %2153, %v403_v0   ;;  %s2475_s12 = scalar_lea.vmem %s2918_s0, %s2067_s25  ;;  %v1964_v20 = vld [vmem:[%s2917_s1 + $0x10] sm:$0xff]  ;;  %s2342_s25 = smov 119  }
  0x23   : > { %407 = vperm.xlu2 %2155, %v403_v0   ;;  %v2478_v5 = vld [vmem:[%s2475_s12] sm:$0xff]  ;;  %v2485_v10 = vld [vmem:[%s2475_s12 + $0x8] sm:$0xff] }
  0x2a   : > { %444 = vperm.xlu1 %2154, %v404_v4   ;;  %424 = vperm.xlu0 %2153, %v404_v4  }
  0x2b   : > { %412 = vperm.xlu2 %2155, %v404_v4   ;;  %v1967_v4 = vld [vmem:[%s2899_s2 + $0x18] sm:$0xff] }
  0x32   : > { %2156 = vset.pattern.permute.xlu1 %v2326_v3 }
  0x7d   : > { %v408_v24 = vpop.permute.xlu2 %407 }
  0x7e   : > { %v415_v35 = vmul.f32 %v408_v24, %v2478_v5 }
  0x85   : > { %v413_v25 = vpop.permute.xlu2 %412 }
  0x86   : > { %v416_v33 = vmul.f32 %v413_v25, %v2485_v10 }
  0x94   : > { %v441_v6 = vpop.permute.xlu1 %440  ;;  %v421_v7 = vpop.permute.xlu0 %420 }
  0x95   : > { %v447_v8 = vmul.f32 %v441_v6, %v2478_v5  ;;  %v427_v9 = vmul.f32 %v421_v7, %v2478_v5  ;;  %v2568_v6 = vld [vmem:[%s2917_s1 + $0x20] sm:$0xff]  ;;  %v2576_v7 = vld [vmem:[%s2917_s1 + $0x28] sm:$0xff] }
  0x97   : > { %451 = vrot.lane.b32.xlu2 %v447_v8, %s2909_s13  ;;  %431 = vrot.lane.b32.xlu0 %v427_v9, %s2911_s14 }
  0x9c   : > { %v445_v11 = vpop.permute.xlu1 %444  ;;  %v425_v12 = vpop.permute.xlu0 %424 }
  0x9d   : > { %v448_v14 = vmul.f32 %v445_v11, %v2485_v10  ;;  %v428_v15 = vmul.f32 %v425_v12, %v2485_v10  ;;  %v2333_v11 = vmov 5  }
  0x9f   : > { %433 = vrot.lane.b32.xlu1 %v428_v15, %s2911_s14  ;;  %468 = vperm.xlu2 %2155, %v460_v13   ;;  %s2332_s14 = smov 124  }
  0xa0   : > { %453 = vrot.lane.b32.xlu0 %v448_v14, %s2909_s13  ;;  %s2080_s13 = sshll.u32 %s2429_s6, 4 }
  0xa7   : > { %463 = vperm.xlu1 %2156, %v459_v16   ;;  %519 = vperm.xlu2 %2155, %v1933_v17  }
  0xa8   : > { %801 = vperm.xlu0 %2153, %v1965_v18  }
  0xaf   : > { %485 = vperm.xlu1 %2156, %v477_v19   ;;  %2157 = vset.pattern.permute.xlu2 %v2325_v2 }
  0xb0   : > { %797 = vperm.xlu2 %2157, %v1964_v20   ;;  %2162 = vset.pattern.permute.xlu0 %v2329_v21 }
  0xb1   : > { %857 = vperm.xlu0 %2162, %v1964_v20  }
  0xb7   : > { %524 = vperm.xlu1 %2156, %v1934_v22  }
  0xb8   : > { %2159 = vset.pattern.permute.xlu2 %v2324_v1 }
  0xb9   : > { %821 = vperm.xlu2 %2159, %v1965_v18   ;;  %2163 = vset.pattern.permute.xlu0 %v2326_v3 }
  0xba   : > { %480 = vperm.xlu0 %2163, %v476_v27  }
  0xbf   : > { %2158 = vset.pattern.permute.xlu1 %v2324_v1 }
  0xc0   : > { %817 = vperm.xlu1 %2158, %v1964_v20  }
  0xc1   : > { %2161 = vset.pattern.permute.xlu2 %v2330_v23 }
  0xc2   : > { %841 = vperm.xlu2 %2161, %v1965_v18   ;;  %789 = vperm.xlu0 %2163, %v1965_v18  }
  0xc8   : > { %2160 = vset.pattern.permute.xlu1 %v2330_v23 }
  0xc9   : > { %837 = vperm.xlu1 %2160, %v1964_v20  }
  0xd1   : > { %2164 = vset.pattern.permute.xlu1 %v2329_v21 }
  0xd2   : > { %861 = vperm.xlu1 %2164, %v1965_v18  }
  0xda   : > { %2165 = vset.pattern.permute.xlu1 %v2326_v3 }
  0xdb   : > { %784 = vperm.xlu1 %2165, %v1964_v20  }
  0xf1   : > { %v452_v26 = vpop.permute.xlu2 %451 }
  0xf9   : > { %v469_v28 = vpop.permute.xlu2 %468 }
 0x101   : > { %v2524_v29 = vpop.permute.xlu2 %519 }
 0x109   : > { %v432_v30 = vpop.permute.xlu0 %431 }
 0x10a   : > { %v798_v31 = vpop.permute.xlu2 %797  ;;  %v437_v38 = vadd.f32 %v432_v30, %v415_v35 }
 0x10b   : > { %v804_v32 = vmul.f32 %v798_v31, %v2478_v5 }
 0x10c   : > { %v457_v40 = vadd.f32 %v452_v26, %v437_v38 }
 0x10d   : > { %808 = vrot.lane.b32.xlu1 %v804_v32, %s2919_s23 }
 0x111   : > { %v434_v34 = vpop.permute.xlu1 %433 }
 0x112   : > { %v438_v36 = vadd.f32 %v434_v34, %v416_v33  ;;  %v454_v37 = vpop.permute.xlu0 %453  ;;  %v2336_v33 = vmov 7   ;;  %v1971_v34 = vld [vmem:[%s2901_s4 + $0x48] sm:$0xff] }
 0x113   : > { %v822_v47 = vpop.permute.xlu2 %821 }
 0x114   : > { %v458_v39 = vadd.f32 %v454_v37, %v438_v36  ;;  %v825_v51 = vmul.f32 %v822_v47, %v2485_v10 }
 0x116   : > { %v472_v42 = vadd.f32 %v469_v28, %v458_v39 }
 0x119   : > { %v464_v41 = vpop.permute.xlu1 %463 }
 0x11a   : > { %v471_v43 = vadd.f32 %v464_v41, %v457_v40  ;;  %v802_v44 = vpop.permute.xlu0 %801 }
 0x11b   : > { %v805_v45 = vmul.f32 %v802_v44, %v2485_v10 }
 0x11c   : > { %v473_v46 = vpack.c.bf16 %v472_v42, %v471_v43  ;;  %v842_v52 = vpop.permute.xlu2 %841  ;;  %v2070_v42 = vld [vmem:[%s2900_s3 + $0x10] sm:$0xff] }
 0x11d   : > { %810 = vrot.lane.b32.xlu1 %v805_v45, %s2919_s23  ;;  %v845_v53 = vmul.f32 %v842_v52, %v2485_v10 }
 0x11e   : > { %504 = vmatpush.bf16.msra.mxu0 %v473_v46  ;;  %542 = vmatpush.bf16.msra.mxu1 %v473_v46 }
 0x11f   : > { %580 = vmatpush.bf16.msra.mxu2 %v473_v46 }
 0x121   : > { %v2538_v50 = vpop.permute.xlu1 %485  ;;  %1930 = vmatmul.msk.bf16.vlgmr.msra.gmra.mxu0 %vm493_vm0, %v2068_v48  ;;  %1939 = vmatmul.msk.bf16.vlgmr.msra.gmra.mxu1 %vm493_vm0, %v2069_v49  ;;  %v2072_v49 = vld [vmem:[%s2900_s3 + $0x20] sm:$0xff] }
 0x122   : > { %1948 = vmatmul.msk.bf16.vlgmr.msra.gmra.mxu2 %vm493_vm0, %v2070_v42 }
 0x123   : > { %v858_v55 = vpop.permute.xlu0 %857 }
 0x124   : > { %v864_v56 = vmul.f32 %v858_v55, %v2478_v5 }
 0x125   : > { %830 = vrot.lane.b32.xlu1 %v825_v51, %s2920_s16  ;;  %v1943_v51 = vld [vmem:[%s2901_s4 + $0x28] sm:$0xff] }
 0x126   : > { %868 = vrot.lane.b32.xlu2 %v864_v56, %s2332_s14 }
 0x129   : > { %v525_v54 = vpop.permute.xlu1 %524 }
 0x12c   : > { %v481_v8 = vpop.permute.xlu0 %480 }
 0x12d   : > { %850 = vrot.lane.b32.xlu1 %v845_v53, %s2331_s17  ;;  %v2337_v53 = vmov 8  }
 0x132   : > { %v818_v57 = vpop.permute.xlu1 %817 }
 0x133   : > { %v824_v59 = vmul.f32 %v818_v57, %v2478_v5 }
 0x134   : > { %v790_v14 = vpop.permute.xlu0 %789 }
 0x135   : > { %828 = vrot.lane.b32.xlu0 %v824_v59, %s2920_s16  ;;  %881 = vperm.xlu1 %2165, %v1966_v58   ;;  %v793_v32 = vmul.f32 %v790_v14, %v2485_v10 }
 0x13b   : > { %v838_v61 = vpop.permute.xlu1 %837 }
 0x13c   : > { %v844_v62 = vmul.f32 %v838_v61, %v2478_v5 }
 0x13d   : > { %900 = vperm.xlu1 %2165, %v1970_v60  }
 0x13e   : > { %848 = vrot.lane.b32.xlu0 %v844_v62, %s2331_s17 }
 0x144   : > { %v862_v63 = vpop.permute.xlu1 %861 }
 0x145   : > { %v865_v0 = vmul.f32 %v862_v63, %v2485_v10  ;;  %2166 = vset.pattern.permute.xlu1 %v2325_v2  ;;  %v2073_v63 = vld [vmem:[%s2900_s3 + $0x28] sm:$0xff] }
 0x146   : > { %1216 = vperm.xlu1 %2166, %v2568_v6  }
 0x147   : > { %870 = vrot.lane.b32.xlu0 %v865_v0, %s2332_s14 }
 0x14e   : > { %2168 = vset.pattern.permute.xlu1 %v2324_v1  ;;  %v1942_v1 = vld [vmem:[%s2901_s4 + $0x20] sm:$0xff] }
 0x14f   : > { %886 = vperm.xlu0 %2163, %v1967_v4   ;;  %1236 = vperm.xlu1 %2168, %v2568_v6  }
 0x157   : > { %2167 = vset.pattern.permute.xlu0 %v2325_v2  ;;  %1240 = vperm.xlu1 %2168, %v2576_v7   ;;  %v785_v2 = vpop.permute.xlu1 %784 }
 0x158   : > { %1220 = vperm.xlu0 %2167, %v2576_v7   ;;  %v792_v26 = vmul.f32 %v785_v2, %v2478_v5 }
 0x15f   : > { %2170 = vset.pattern.permute.xlu1 %v2330_v23 }
 0x160   : > { %2169 = vset.pattern.permute.xlu0 %v2330_v23  ;;  %1260 = vperm.xlu1 %2170, %v2576_v7   ;;  %v2334_v23 = vmov 6  }
 0x161   : > { %1256 = vperm.xlu0 %2169, %v2568_v6  }
 0x168   : > { %2171 = vset.pattern.permute.xlu1 %v2326_v3 }
 0x169   : > { %557 = vperm.xlu1 %2171, %v1942_v1   ;;  %2173 = vset.pattern.permute.xlu0 %v2333_v11 }
 0x16a   : > { %1296 = vperm.xlu0 %2173, %v2568_v6  }
 0x171   : > { %2172 = vset.pattern.permute.xlu1 %v2329_v21 }
 0x172   : > { %1276 = vperm.xlu1 %2172, %v2568_v6   ;;  %2176 = vset.pattern.permute.xlu0 %v2334_v23 }
 0x173   : > { %1320 = vperm.xlu0 %2176, %v2576_v7  }
 0x17a   : > { %1280 = vperm.xlu1 %2172, %v2576_v7  }
 0x17f   : > { %v809_v9 = vpop.permute.xlu1 %808 }
 0x180   : > { %v814_v27 = vadd.f32 %v809_v9, %v792_v26  ;;  %v869_v37 = vpop.permute.xlu2 %868 }
 0x182   : > { %2174 = vset.pattern.permute.xlu1 %v2333_v11 }
 0x183   : > { %1300 = vperm.xlu1 %2174, %v2576_v7  }
 0x18b   : > { %2175 = vset.pattern.permute.xlu1 %v2334_v23 }
 0x18c   : > { %1316 = vperm.xlu1 %2175, %v2568_v6  }
 0x18f   : > { %v811_v16 = vpop.permute.xlu1 %810 }
 0x190   : > { %v815_v38 = vadd.f32 %v811_v16, %v793_v32 }
 0x194   : > { %2177 = vset.pattern.permute.xlu1 %v2336_v33 }
 0x195   : > { %1336 = vperm.xlu1 %2177, %v2568_v6  }
 0x197   : > { %v831_v25 = vpop.permute.xlu1 %830 }
 0x198   : > { %v835_v39 = vadd.f32 %v831_v25, %v815_v38 }
 0x19d   : > { %1340 = vperm.xlu1 %2177, %v2576_v7  }
 0x19e   : > { %v506_v12 = vpop.f32.mrf.mxu0  ;;  %v544_v13 = vpop.f32.mrf.mxu1 }
 0x19f   : > { %v507_v15 = vadd.f32 %v506_v12, %v481_v8  ;;  %v545_v19 = vadd.f32 %v544_v13, %v2524_v29  ;;  %v2335_v29 = vmov 9   ;;  %v851_v31 = vpop.permute.xlu1 %850 }
 0x1a0   : > { %2181 = vset.pattern.permute.xlu0 %v2335_v29  ;;  %v855_v43 = vadd.f32 %v851_v31, %v835_v39 }
 0x1a1   : > { %587 = vxpose.xlu2.b32.start [1/2] (short) (narrow) %v507_v15, 32  ;;  %1376 = vperm.xlu0 %2181, %v2568_v6  }
 0x1a5   : > { %2178 = vset.pattern.permute.xlu1 %v2326_v3 }
 0x1a6   : > { %v508_v17 = vpop.f32.mrf.mxu0  ;;  %v546_v18 = vpop.f32.mrf.mxu1 }
 0x1a7   : > { %v509_v20 = vadd.f32 %v508_v17, %v2538_v50  ;;  %v547_v21 = vadd.f32 %v546_v18, %v525_v54  ;;  %v829_v22 = vpop.permute.xlu0 %828  ;;  %v882_v41 = vpop.permute.xlu1 %881  ;;  %v1980_v50 = vld [vmem:[%s2901_s4 + $0x58] sm:$0xff]  ;;  %v1979_v54 = vld [vmem:[%s2901_s4 + $0x50] sm:$0xff] }
 0x1a8   : > { %v834_v30 = vadd.f32 %v829_v22, %v814_v27  ;;  %943 = vperm.xlu1 %2178, %v1980_v50  }
 0x1a9   : > { %588 = vxpose.xlu2.b32.end [2/2] (short) (narrow) %v509_v20, 32  ;;  %v621_v24 = vpack.c.bf16 %v547_v21, %v545_v19  ;;  %2182 = vset.pattern.permute.xlu0 %v2326_v3 }
 0x1aa   : > { %905 = vperm.xlu0 %2182, %v1971_v34  }
 0x1ab   : > { %635 = vmatpush.bf16.msra.mxu3 %v621_v24 }
 0x1af   : > { %v2625_v52 = vpop.permute.xlu1 %900 }
 0x1b0   : > { %v849_v28 = vpop.permute.xlu0 %848  ;;  %2179 = vset.pattern.permute.xlu1 %v2337_v53 }
 0x1b1   : > { %v854_v35 = vadd.f32 %v849_v28, %v834_v30  ;;  %1356 = vperm.xlu1 %2179, %v2568_v6  }
 0x1b2   : > { %562 = vperm.xlu0 %2182, %v1943_v51  }
 0x1b3   : > { %v874_v40 = vadd.f32 %v869_v37, %v854_v35 }
 0x1b5   : > { %v889_v45 = vadd.f32 %v882_v41, %v874_v40  ;;  %v2671_v41 = vpop.f32.mrf.mxu2 }
 0x1b8   : > { %v1217_v55 = vpop.permute.xlu1 %1216 }
 0x1b9   : > { %v871_v36 = vpop.permute.xlu0 %870  ;;  %2183 = vset.pattern.permute.xlu1 %v2335_v29  ;;  %v1223_v58 = vmul.f32 %v1217_v55, %v2478_v5 }
 0x1ba   : > { %v875_v44 = vadd.f32 %v871_v36, %v855_v43  ;;  %938 = vperm.xlu0 %2182, %v1979_v54   ;;  %1380 = vperm.xlu1 %2183, %v2576_v7  }
 0x1c1   : > { %v887_v46 = vpop.permute.xlu0 %886  ;;  %v1237_v56 = vpop.permute.xlu1 %1236 }
 0x1c2   : > { %v890_v47 = vadd.f32 %v887_v46, %v875_v44  ;;  %1208 = vperm.xlu0 %2182, %v2576_v7   ;;  %v1243_v57 = vmul.f32 %v1237_v56, %v2478_v5  ;;  %2184 = vset.pattern.permute.xlu1 %v2326_v3 }
 0x1c3   : > { %1203 = vperm.xlu1 %2184, %v2568_v6  }
 0x1c4   : > { %v2610_v48 = vpack.c.bf16 %v890_v47, %v889_v45  ;;  %v584_v45 = vpop.f32.mrf.mxu2 }
 0x1c6   : > { %923 = vmatpush.bf16.msrb.mxu1 %v2610_v48  ;;  %961 = vmatpush.bf16.msrb.mxu2 %v2610_v48 }
 0x1c9   : > { %1976 = vmatmul.msk.bf16.vlgmr.msrb.gmra.mxu1 %vm493_vm0, %v2072_v49  ;;  %v1241_v59 = vpop.permute.xlu1 %1240  ;;  %1985 = vmatmul.msk.bf16.vlgmr.msrb.gmra.mxu2 %vm493_vm0, %v2073_v63 }
 0x1ca   : > { %1247 = vrot.lane.b32.xlu0 %v1243_v57, %s2920_s16  ;;  %v1221_v62 = vpop.permute.xlu0 %1220  ;;  %v1244_v4 = vmul.f32 %v1241_v59, %v2485_v10 }
 0x1cb   : > { %1227 = vrot.lane.b32.xlu1 %v1223_v58, %s2919_s23  ;;  %v1224_v0 = vmul.f32 %v1221_v62, %v2485_v10 }
 0x1d2   : > { %v1261_v60 = vpop.permute.xlu1 %1260 }
 0x1d3   : > { %1229 = vrot.lane.b32.xlu1 %v1224_v0, %s2919_s23  ;;  %v1257_v1 = vpop.permute.xlu0 %1256  ;;  %v1264_v8 = vmul.f32 %v1261_v60, %v2485_v10  ;;  %s2338_s23 = smov 123  }
 0x1d4   : > { %v1263_v2 = vmul.f32 %v1257_v1, %v2478_v5 }
 0x1d6   : > { %1267 = vrot.lane.b32.xlu0 %v1263_v2, %s2331_s17 }
 0x1db   : > { %v2639_v61 = vpop.permute.xlu1 %557  ;;  %1249 = vrot.lane.b32.xlu1 %v1244_v4, %s2920_s16  ;;  %s2339_s16 = smov 122  }
 0x1dc   : > { %v2655_v12 = vpop.permute.xlu0 %1296 }
 0x1e3   : > { %1269 = vrot.lane.b32.xlu1 %v1264_v8, %s2331_s17  ;;  %s2340_s17 = smov 121   ;;  %v1303_v8 = vmul.f32 %v2655_v12, %v2478_v5 }
 0x1e4   : > { %v1277_v6 = vpop.permute.xlu1 %1276 }
 0x1e5   : > { %v1283_v9 = vmul.f32 %v1277_v6, %v2478_v5  ;;  %v1321_v16 = vpop.permute.xlu0 %1320 }
 0x1e6   : > { %v1324_v17 = vmul.f32 %v1321_v16, %v2485_v10 }
 0x1e7   : > { %1287 = vrot.lane.b32.xlu0 %v1283_v9, %s2332_s14 }
 0x1ec   : > { %v1281_v11 = vpop.permute.xlu1 %1280 }
 0x1ed   : > { %v1284_v13 = vmul.f32 %v1281_v11, %v2485_v10 }
 0x1ef   : > { %1289 = vrot.lane.b32.xlu1 %v1284_v13, %s2332_s14  ;;  %s2341_s14 = smov 120  }
 0x1f5   : > { %v1301_v14 = vpop.permute.xlu1 %1300 }
 0x1f6   : > { %v1304_v15 = vmul.f32 %v1301_v14, %v2485_v10 }
 0x1f8   : > { %1309 = vrot.lane.b32.xlu0 %v1304_v15, %s2338_s23 }
 0x1fe   : > { %v1317_v18 = vpop.permute.xlu1 %1316 }
 0x1ff   : > { %v1323_v19 = vmul.f32 %v1317_v18, %v2478_v5 }
 0x200   : > { %1329 = vrot.lane.b32.xlu0 %v1324_v17, %s2339_s16 }
 0x201   : > { %1327 = vrot.lane.b32.xlu1 %v1323_v19, %s2339_s16  ;;  %s2056_s16 = sld [smem:[#allocation3 + $0x2]] }
 0x207   : > { %v1337_v20 = vpop.permute.xlu1 %1336 }
 0x208   : > { %v1343_v21 = vmul.f32 %v1337_v20, %v2478_v5 }
 0x20a   : > { %1347 = vrot.lane.b32.xlu1 %v1343_v21, %s2340_s17 }
 0x20b   : > { %2180 = vset.pattern.permute.xlu2 %v2337_v53 }
 0x20f   : > { %v1341_v22 = vpop.permute.xlu1 %1340 }
 0x210   : > { %v1344_v23 = vmul.f32 %v1341_v22, %v2485_v10 }
 0x212   : > { %1349 = vrot.lane.b32.xlu0 %v1344_v23, %s2340_s17 }
 0x213   : > { %v1377_v27 = vpop.permute.xlu0 %1376 }
 0x214   : > { %v1383_v33 = vmul.f32 %v1377_v27, %v2478_v5 }
 0x21a   : > { %v944_v25 = vpop.permute.xlu1 %943 }
 0x21c   : > { %v906_v34 = vpop.permute.xlu0 %905 }
 0x222   : > { %1360 = vperm.xlu2 %2180, %v2576_v7  }
 0x223   : > { %v1357_v28 = vpop.permute.xlu1 %1356 }
 0x224   : > { %v1363_v29 = vmul.f32 %v1357_v28, %v2478_v5  ;;  %v563_v40 = vpop.permute.xlu0 %562 }
 0x225   : > { %v2674_v47 = vadd.f32 %v584_v45, %v563_v40 }
 0x226   : > { %1367 = vrot.lane.b32.xlu1 %v1363_v29, %s2341_s14 }
 0x22c   : > { %v1381_v39 = vpop.permute.xlu1 %1380  ;;  %v939_v44 = vpop.permute.xlu0 %938 }
 0x22d   : > { %v1384_v60 = vmul.f32 %v1381_v39, %v2485_v10 }
 0x22e   : > { %1387 = vrot.lane.b32.xlu1 %v1383_v33, %s2342_s25 }
 0x234   : > { %v1209_v50 = vpop.permute.xlu0 %1208 }
 0x235   : > { %v1204_v42 = vpop.permute.xlu1 %1203  ;;  %v1212_v51 = vmul.f32 %v1209_v50, %v2485_v10 }
 0x236   : > { %v1211_v43 = vmul.f32 %v1204_v42, %v2478_v5 }
 0x23a   : > { %v603_v24 = vpop.trf.xlu2 }
 0x23c   : > { %v1248_v56 = vpop.permute.xlu0 %1247 }
 0x23d   : > { %v1228_v46 = vpop.permute.xlu1 %1227 }
 0x23e   : > { %v1233_v49 = vadd.f32 %v1228_v46, %v1211_v43 }
 0x240   : > { %v1253_v57 = vadd.f32 %v1248_v56, %v1233_v49 }
 0x242   : > { %v604_v26 = vpop.trf.xlu2 }
 0x243   : > { %v619_v7 = vpack.c.bf16 %v604_v26, %v603_v24 }
 0x245   : > { %1949 = vmatmul.msk.bf16.vlgmr.msra.gmra.mxu3 %vm493_vm0, %v619_v7 }
 0x246   : > { %v925_v30 = vpop.f32.mrf.mxu1 }
 0x247   : > { %v926_v31 = vadd.f32 %v925_v30, %v2625_v52  ;;  %v1230_v52 = vpop.permute.xlu1 %1229 }
 0x248   : > { %v1234_v53 = vadd.f32 %v1230_v52, %v1212_v51  ;;  %v1268_v62 = vpop.permute.xlu0 %1267 }
 0x249   : > { %1006 = vxpose.xlu2.b32.start [1/2] (short) (narrow) %v926_v31, 32  ;;  %v2681_v0 = vadd.f32 %v1268_v62, %v1253_v57 }
 0x24a   : > { %v605_v32 = vpop.trf.xlu2 }
 0x24c   : > { %v963_v63 = vpop.f32.mrf.mxu2 }
 0x24d   : > { %v964_v4 = vadd.f32 %v963_v63, %v939_v44 }
 0x24e   : > { %v927_v35 = vpop.f32.mrf.mxu1 }
 0x24f   : > { %v928_v36 = vadd.f32 %v927_v35, %v906_v34  ;;  %v1250_v58 = vpop.permute.xlu1 %1249 }
 0x250   : > { %v2678_v59 = vadd.f32 %v1250_v58, %v1234_v53 }
 0x251   : > { %1007 = vxpose.xlu2.b32.end [2/2] (short) (narrow) %v928_v36, 32 }
 0x252   : > { %v606_v37 = vpop.trf.xlu2 }
 0x253   : > { %v620_v38 = vpack.c.bf16 %v606_v37, %v605_v32 }
 0x254   : > { %v965_v6 = vpop.f32.mrf.mxu2 }
 0x255   : > { %1950 = vmatmul.msk.bf16.gmra.mxu3 %vm493_vm0, %v620_v38  ;;  %v966_v1 = vadd.f32 %v965_v6, %v944_v25 }
 0x257   : > { %v1040_v2 = vpack.c.bf16 %v966_v1, %v964_v4 }
 0x259   : > { %1054 = vmatpush.bf16.msra.mxu1 %v1040_v2 }
 0x27c   : > { %v1361_v54 = vpop.permute.xlu2 %1360 }
 0x27d   : > { %v1364_v55 = vmul.f32 %v1361_v54, %v2485_v10 }
 0x27f   : > { %1369 = vrot.lane.b32.xlu0 %v1364_v55, %s2341_s14  ;;  %s1839_s14 = scalar_lea.hbm %s2908_s11, %s2080_s13  ;;  %s2275_s13 = scalar_lea.hbm %s2908_s11, 64 }
 0x280   : > { %s1842_s26 = sshll.u32 %s1839_s14, 4  ;;  %s1843_s26 = int_to_ptr.hbm [resolvable:$true] %s1842_s26 }
 0x281   : > { %s2269_s0 = sshra.s32 %s1843_s26, 4  ;;  %s2270_s0 = int_to_ptr.hbm [resolvable:$true] %s2269_s0 }
 0x282   : > { %s2271_s6 = scalar_lea.hbm %s2270_s0, 16  ;;  %p2276_p3 = scmp.lt.s32.totalorder %s2270_s0, %s2908_s11 }
 0x283   : > { %p2272_p0 = scmp.ne.s32.totalorder %s2270_s0, %s2271_s6  ;;  %p2277_p4 = scmp.lt.s32.totalorder %s2275_s13, %s2271_s6 }
 0x285   : > { %p2273_p1 = pnand %p2272_p0, %p2446_p5  ;;  %p2278_p7 = por %p2277_p4, %p2276_p3 }
 0x287   : > { %1389 = vrot.lane.b32.xlu0 %v1384_v60, %s2342_s25  ;;  %s1711_s25 = sld [smem:[#allocation2]]  ;;  %p2274_p2 = pneg %p2273_p1 }
 0x289   : > { %p2279_p8 = pnand %p2278_p7, %p2274_p2 }
 0x2c8   : > { %v637_v9 = vpop.f32.mrf.mxu3 }
 0x2c9   : > { %v1951_v11 = vmul.f32 -1.442695, %v637_v9 }
 0x2ca   : > { %1307 = vrot.lane.b32.xlu2 %v1303_v8, %s2338_s23  ;;  %s2055_s23 = sld [smem:[#allocation3 + $0x1]] }
 0x2cb   : > { %2186 = vpow2.f32 %v1951_v11 }
 0x2d0   : > { %v639_v13 = vpop.f32.mrf.mxu3 }
 0x2d1   : > { %v1952_v10 = vmul.f32 -1.442695, %v639_v13  ;;  %v2187_v14 = vpop.eup %2186 }
 0x2d2   : > { %v2686_v15 = vadd.f32 1.0, %v2187_v14 }
 0x2d3   : > { %2188 = vpow2.f32 %v1952_v10 }
 0x2d4   : > { %2190 = vrcp.f32 %v2686_v15  ;;  %vm668_vm5 = vweird.f32 %v2686_v15  ;;  %v672_v43 = vand.u32 2147483647, %v2686_v15  ;;  %v674_v44 = vand.u32 2147483648, %v2686_v15 }
 0x2d6   : > { %v675_v60 = vor.u32 1.1754944e-38, %v674_v44  ;;  %vm673_vm11 = vcmp.eq.f32.partialorder %v672_v43, 8.507059e+37 }
 0x2d8   : > { %v642_v16 = vpop.f32.mrf.mxu3 }
 0x2d9   : > { %v2189_v17 = vpop.eup %2188  ;;  %v1953_v18 = vmul.f32 -1.442695, %v642_v16 }
 0x2da   : > { %v660_v19 = vadd.f32 1.0, %v2189_v17  ;;  %v2191_v5 = vpop.eup %2190 }
 0x2db   : > { %2192 = vpow2.f32 %v1953_v18  ;;  %v664_v25 = vmul.f32 %v2191_v5, %v2686_v15  ;;  %vm669_vm2 = vweird.f32 %v2191_v5 }
 0x2dc   : > { %2194 = vrcp.f32 %v660_v19  ;;  %vm683_vm3 = vweird.f32 %v660_v19  ;;  %v689_v38 = vand.u32 2147483648, %v660_v19  ;;  %v687_v40 = vand.u32 2147483647, %v660_v19  ;;  %vm2698_vm7 = vmor %vm668_vm5, %vm669_vm2 }
 0x2dd   : > { %v665_v7 = vsub.f32 1.0, %v664_v25  ;;  %vm729_vm2 = vcmask 242688  }
 0x2de   : > { %v690_v54 = vor.u32 1.1754944e-38, %v689_v38  ;;  %vm688_vm10 = vcmp.eq.f32.partialorder %v687_v40, 8.507059e+37  ;;  %v1288_v38 = vpop.permute.xlu0 %1287 }
 0x2df   : > { %v666_v33 = vmul.f32 %v2191_v5, %v665_v7  ;;  %v583_v7 = vadd.f32 %v2671_v41, %v2639_v61  ;;  %v2017_v61 = vld [vmem:[%s2901_s4 + $0x88] sm:$0xff]  ;;  %v2016_v41 = vld [vmem:[%s2901_s4 + $0x80] sm:$0xff] }
 0x2e0   : > { %v644_v12 = vpop.f32.mrf.mxu3 }
 0x2e1   : > { %v2193_v20 = vpop.eup %2192  ;;  %v1954_v21 = vmul.f32 -1.442695, %v644_v12  ;;  %v667_v39 = vadd.f32 %v2191_v5, %v666_v33  ;;  %v2013_v33 = vld [vmem:[%s2899_s2 + $0x28] sm:$0xff] }
 0x2e2   : > { %v2195_v22 = vpop.eup %2194  ;;  %v661_v23 = vadd.f32 1.0, %v2193_v20  ;;  %v1022_v24 = vpop.trf.xlu2 }
 0x2e3   : > { %v679_v26 = vmul.f32 %v2195_v22, %v660_v19  ;;  %2196 = vpow2.f32 %v1954_v21  ;;  %vm684_vm1 = vweird.f32 %v2195_v22  ;;  %v671_v57 = vsel %vm2698_vm7, %v2191_v5, %v667_v39  ;;  %v1270_v39 = vpop.permute.xlu1 %1269 }
 0x2e4   : > { %2198 = vrcp.f32 %v661_v23  ;;  %vm2694_vm6 = vmor %vm683_vm3, %vm684_vm1  ;;  %v704_v46 = vand.u32 2147483648, %v661_v23  ;;  %vm698_vm8 = vweird.f32 %v661_v23  ;;  %v702_v51 = vand.u32 2147483647, %v661_v23 }
 0x2e5   : > { %v680_v27 = vsub.f32 1.0, %v679_v26  ;;  %v676_v1 = vsel %vm673_vm11, %v675_v60, %v671_v57  ;;  %v1274_v57 = vadd.f32 %v1270_v39, %v2678_v59  ;;  %v1293_v60 = vadd.f32 %v1288_v38, %v2681_v0 }
 0x2e6   : > { %v705_v62 = vor.u32 1.1754944e-38, %v704_v46  ;;  %vm703_vm12 = vcmp.eq.f32.partialorder %v702_v51, 8.507059e+37  ;;  %v724_v10 = vsel %vm723_vm13, %v676_v1, 0.0  ;;  %v1310_v40 = vpop.permute.xlu0 %1309 }
 0x2e7   : > { %v681_v29 = vmul.f32 %v2195_v22, %v680_v27 }
 0x2e9   : > { %v2197_v28 = vpop.eup %2196  ;;  %v682_v36 = vadd.f32 %v2195_v22, %v681_v29 }
 0x2ea   : > { %v2199_v30 = vpop.eup %2198  ;;  %v662_v31 = vadd.f32 1.0, %v2197_v28  ;;  %v1023_v32 = vpop.trf.xlu2 }
 0x2eb   : > { %v694_v34 = vmul.f32 %v2199_v30, %v661_v23  ;;  %v1038_v35 = vpack.c.bf16 %v1023_v32, %v1022_v24  ;;  %vm699_vm4 = vweird.f32 %v2199_v30  ;;  %v686_v52 = vsel %vm2694_vm6, %v2195_v22, %v682_v36  ;;  %v2026_v36 = vld [vmem:[%s2901_s4 + $0x98] sm:$0xff] }
 0x2ec   : > { %2200 = vrcp.f32 %v662_v31  ;;  %vm700_vm9 = vmor %vm698_vm8, %vm699_vm4  ;;  %v691_v63 = vsel %vm688_vm10, %v690_v54, %v686_v52  ;;  %v719_v6 = vand.u32 2147483648, %v662_v31  ;;  %v717_v9 = vand.u32 2147483647, %v662_v31 }
 0x2ed   : > { %v695_v37 = vsub.f32 1.0, %v694_v34  ;;  %1995 = vmatmul.msk.bf16.vlgmr.msra.gmra.mxu1 %vm493_vm0, %v1038_v35  ;;  %v725_v11 = vsel %vm723_vm13, %v691_v63, 0.0  ;;  %vm713_vm15 = vweird.f32 %v662_v31  ;;  %v2012_v34 = vld [vmem:[%s2899_s2 + $0x20] sm:$0xff] }
 0x2ee   : > { %v720_v15 = vor.u32 1.1754944e-38, %v719_v6  ;;  %v726_v16 = vadd.f32 %v725_v11, %v724_v10  ;;  %vm718_vm3 = vcmp.eq.f32.partialorder %v717_v9, 8.507059e+37  ;;  %v1988_v35 = vld [vmem:[%s2901_s4 + $0x60] sm:$0xff]  ;;  %v1330_v44 = vpop.permute.xlu0 %1329 }
 0x2ef   : > { %v696_v42 = vmul.f32 %v2199_v30, %v695_v37  ;;  %v2025_v37 = vld [vmem:[%s2901_s4 + $0x90] sm:$0xff] }
 0x2f1   : > { %v697_v50 = vadd.f32 %v2199_v30, %v696_v42  ;;  %v1290_v42 = vpop.permute.xlu1 %1289 }
 0x2f2   : > { %v2201_v53 = vpop.eup %2200  ;;  %v1024_v55 = vpop.trf.xlu2 }
 0x2f3   : > { %v709_v56 = vmul.f32 %v2201_v53, %v662_v31  ;;  %v701_v58 = vsel %vm700_vm9, %v2199_v30, %v697_v50  ;;  %vm714_vm14 = vweird.f32 %v2201_v53 }
 0x2f4   : > { %v706_v2 = vsel %vm703_vm12, %v705_v62, %v701_v58  ;;  %vm715_vm1 = vmor %vm713_vm15, %vm714_vm14  ;;  %v1294_v62 = vadd.f32 %v1290_v42, %v1274_v57 }
 0x2f5   : > { %v710_v4 = vsub.f32 1.0, %v709_v56  ;;  %v727_v14 = vsel %vm723_vm13, %v706_v2, 0.0  ;;  %v2071_v56 = vld [vmem:[%s2900_s3 + $0x18] sm:$0xff] }
 0x2f6   : > { %v728_v12 = vadd.f32 %v727_v14, %v726_v16  ;;  %v1350_v46 = vpop.permute.xlu0 %1349 }
 0x2f7   : > { %v711_v8 = vmul.f32 %v2201_v53, %v710_v4  ;;  %v1314_v4 = vadd.f32 %v1310_v40, %v1294_v62 }
 0x2f9   : > { %v712_v13 = vadd.f32 %v2201_v53, %v711_v8  ;;  %v1328_v43 = vpop.permute.xlu1 %1327  ;;  %v1334_v1 = vadd.f32 %v1330_v44, %v1314_v4  ;;  %v2074_v8 = vld [vmem:[%s2900_s3 + $0x30] sm:$0xff] }
 0x2fa   : > { %v1025_v17 = vpop.trf.xlu2 }
 0x2fb   : > { %v716_v18 = vsel %vm715_vm1, %v2201_v53, %v712_v13  ;;  %v1039_v19 = vpack.c.bf16 %v1025_v17, %v1024_v55  ;;  %v1354_v9 = vadd.f32 %v1350_v46, %v1334_v1  ;;  %v2076_v17 = vld [vmem:[%s2900_s3 + $0x40] sm:$0xff] }
 0x2fc   : > { %v721_v5 = vsel %vm718_vm3, %v720_v15, %v716_v18  ;;  %v2077_v18 = vld [vmem:[%s2900_s3 + $0x48] sm:$0xff] }
 0x2fd   : > { %v730_v20 = vsel %vm729_vm2, %v721_v5, 0.0  ;;  %1996 = vmatmul.msk.bf16.gmra.mxu1 %vm493_vm0, %v1039_v19  ;;  %vm1142_vm2 = vcmask 228352  }
 0x2fe   : > { %v731_v21 = vadd.f32 %v730_v20, %v728_v12  ;;  %v1370_v49 = vpop.permute.xlu0 %1369 }
 0x2ff   : > { %v1374_v11 = vadd.f32 %v1370_v49, %v1354_v9 }
 0x300   : > { %v732_v22 = vrot.slane %v731_v21, 4 }
 0x301   : > { %v1348_v45 = vpop.permute.xlu1 %1347 }
 0x302   : > { %v733_v23 = vadd.f32 %v732_v22, %v731_v21 }
 0x304   : > { %v734_v24 = vrot.slane %v733_v23, 2 }
 0x306   : > { %v735_v25 = vadd.f32 %v734_v24, %v733_v23  ;;  %v1390_v51 = vpop.permute.xlu0 %1389 }
 0x308   : > { %v736_v26 = vrot.slane %v735_v25, 1 }
 0x309   : > { %v1368_v50 = vpop.permute.xlu1 %1367 }
 0x30a   : > { %v737_v27 = vadd.f32 %v736_v26, %v735_v25 }
 0x30c   : > { %v739_v28 = vmul.f32 0.033333335, %v737_v27 }
 0x30e   : > { %v740_v29 = vmul.f32 %v739_v28, %v583_v7  ;;  %v741_v30 = vmul.f32 %v739_v28, %v2674_v47  ;;  %v1989_v47 = vld [vmem:[%s2901_s4 + $0x68] sm:$0xff] }
 0x310   : > { %v742_v31 = vsel %vm723_vm13, %v740_v29, 0.0  ;;  %v745_v32 = vsel %vm723_vm13, %v741_v30, 0.0 }
 0x311   : > { %743 = vadd.xlane.f32.xlu1 %v742_v31  ;;  %746 = vadd.xlane.f32.xlu0 %v745_v32  ;;  %v1388_v52 = vpop.permute.xlu1 %1387 }
 0x324   : > { %v1308_v58 = vpop.permute.xlu2 %1307 }
 0x325   : > { %1405 = vperm.xlu0 %2182, %v2013_v33   ;;  %v1313_v63 = vadd.f32 %v1308_v58, %v1293_v60 }
 0x327   : > { %v1333_v6 = vadd.f32 %v1328_v43, %v1313_v63 }
 0x329   : > { %v1353_v2 = vadd.f32 %v1348_v45, %v1333_v6 }
 0x32a   : > { %1400 = vperm.xlu1 %2184, %v2012_v34  }
 0x32b   : > { %v1373_v59 = vadd.f32 %v1368_v50, %v1353_v2 }
 0x32d   : > { %1424 = vperm.xlu0 %2182, %v2017_v61   ;;  %v1393_v0 = vadd.f32 %v1388_v52, %v1373_v59 }
 0x332   : > { %1419 = vperm.xlu1 %2184, %v2016_v41  }
 0x335   : > { %981 = vperm.xlu0 %2182, %v1989_v47  }
 0x33a   : > { %976 = vperm.xlu1 %2184, %v1988_v35  }
 0x33d   : > { %1462 = vperm.xlu0 %2182, %v2026_v36  }
 0x342   : > { %1457 = vperm.xlu1 %2184, %v2025_v37  }
 0x36a   : > { %v1056_v19 = vpop.f32.mrf.mxu1 }
 0x36b   : > { %v1997_v20 = vmul.f32 -1.442695, %v1056_v19 }
 0x36d   : > { %2202 = vpow2.f32 %v1997_v20 }
 0x372   : > { %v1058_v5 = vpop.f32.mrf.mxu1 }
 0x373   : > { %v1998_v21 = vmul.f32 -1.442695, %v1058_v5  ;;  %v2203_v25 = vpop.eup %2202 }
 0x374   : > { %v1078_v27 = vadd.f32 1.0, %v2203_v25 }
 0x375   : > { %2204 = vpow2.f32 %v1998_v21 }
 0x376   : > { %vm1087_vm4 = vweird.f32 %v1078_v27  ;;  %v1091_v43 = vand.u32 2147483647, %v1078_v27  ;;  %v1093_v44 = vand.u32 2147483648, %v1078_v27 }
 0x378   : > { %vm2770_vm10 = vcmp.eq.f32.partialorder %v1091_v43, 8.507059e+37  ;;  %v1094_v57 = vor.u32 1.1754944e-38, %v1093_v44 }
 0x37a   : > { %v1061_v12 = vpop.f32.mrf.mxu1 }
 0x37b   : > { %v1999_v22 = vmul.f32 -1.442695, %v1061_v12  ;;  %v2205_v26 = vpop.eup %2204 }
 0x37c   : > { %v1079_v7 = vadd.f32 1.0, %v2205_v26 }
 0x37d   : > { %2206 = vpow2.f32 %v1999_v22 }
 0x37e   : > { %vm1102_vm6 = vweird.f32 %v1079_v7  ;;  %v1106_v45 = vand.u32 2147483647, %v1079_v7  ;;  %v1108_v46 = vand.u32 2147483648, %v1079_v7 }
 0x380   : > { %vm1107_vm13 = vcmp.eq.f32.partialorder %v1106_v45, 8.507059e+37  ;;  %v1109_v58 = vor.u32 1.1754944e-38, %v1108_v46 }
 0x382   : > { %v1063_v23 = vpop.f32.mrf.mxu1 }
 0x383   : > { %v2000_v24 = vmul.f32 -1.442695, %v1063_v23  ;;  %v2207_v28 = vpop.eup %2206 }
 0x384   : > { %v744_v53 = vpop.xlane.xlu1 %743  ;;  %v747_v54 = vpop.xlane.xlu0 %746  ;;  %v1080_v29 = vadd.f32 1.0, %v2207_v28 }
 0x385   : > { %v751_v55 = vpack.c.bf16 %v747_v54, %v744_v53  ;;  %2208 = vpow2.f32 %v2000_v24 }
 0x386   : > { %2210 = vrcp.f32 %v1078_v27  ;;  %vm1117_vm11 = vweird.f32 %v1080_v29  ;;  %v1121_v60 = vand.u32 2147483647, %v1080_v29 }
 0x387   : > { %770 = vmatpush.bf16.msrb.mxu0 %v751_v55  ;;  %2212 = vrcp.f32 %v1079_v7 }
 0x388   : > { %2214 = vrcp.f32 %v1080_v29  ;;  %vm1122_vm3 = vcmp.eq.f32.partialorder %v1121_v60, 8.507059e+37 }
 0x38a   : > { %1963 = vmatmul.msk.bf16.vlgmr.msrb.gmra.mxu0 %vm493_vm0, %v2071_v56  ;;  %v1123_v56 = vand.u32 2147483648, %v1080_v29 }
 0x38b   : > { %999 = vmatpush.bf16.msra.mxu0 %v2610_v48  ;;  %v1394_v48 = vadd.f32 %v1390_v51, %v1374_v11  ;;  %v2209_v30 = vpop.eup %2208 }
 0x38c   : > { %v1081_v31 = vadd.f32 1.0, %v2209_v30  ;;  %v2211_v32 = vpop.eup %2210  ;;  %v1124_v2 = vor.u32 1.1754944e-38, %v1123_v56 }
 0x38d   : > { %v2213_v33 = vpop.eup %2212  ;;  %v1083_v34 = vmul.f32 %v2211_v32, %v1078_v27  ;;  %vm1088_vm5 = vweird.f32 %v2211_v32 }
 0x38e   : > { %2216 = vrcp.f32 %v1081_v31  ;;  %v1098_v61 = vmul.f32 %v2213_v33, %v1079_v7  ;;  %v2215_v41 = vpop.eup %2214  ;;  %vm1103_vm7 = vweird.f32 %v2213_v33  ;;  %vm2762_vm8 = vmor %vm1087_vm4, %vm1088_vm5  ;;  %vm1132_vm15 = vweird.f32 %v1081_v31 }
 0x38f   : > { %v1084_v47 = vsub.f32 1.0, %v1083_v34  ;;  %v1113_v36 = vmul.f32 %v2215_v41, %v1080_v29  ;;  %vm2766_vm9 = vmor %vm1102_vm6, %vm1103_vm7  ;;  %vm1118_vm12 = vweird.f32 %v2215_v41  ;;  %v1136_v11 = vand.u32 2147483647, %v1081_v31 }
 0x390   : > { %v1099_v35 = vsub.f32 1.0, %v1098_v61  ;;  %vm2778_vm14 = vmor %vm1117_vm11, %vm1118_vm12  ;;  %vm1148_vm6 = vcmask 224256  }
 0x391   : > { %v1085_v38 = vmul.f32 %v2211_v32, %v1084_v47  ;;  %v1114_v40 = vsub.f32 1.0, %v1113_v36  ;;  %vm1137_vm5 = vcmp.eq.f32.partialorder %v1136_v11, 8.507059e+37  ;;  %v1696_v11 = vstv %s1695_s15  ;;  %s392_s15 = sand.u32 1, %s2313_s20  }
 0x392   : > { %v1100_v39 = vmul.f32 %v2213_v33, %v1099_v35  ;;  %s1923_s18 = sshll.u32 %s392_s15, 4  ;;  %s1828_s30 = scalar_lea.sflag [#allocation4], %s392_s15 }
 0x393   : > { %v1086_v49 = vadd.f32 %v2211_v32, %v1085_v38  ;;  %v1115_v52 = vmul.f32 %v2215_v41, %v1114_v40 }
 0x394   : > { %v2217_v37 = vpop.eup %2216  ;;  %v1101_v51 = vadd.f32 %v2213_v33, %v1100_v39 }
 0x395   : > { %v1128_v42 = vmul.f32 %v2217_v37, %v1081_v31  ;;  %v1116_v62 = vadd.f32 %v2215_v41, %v1115_v52  ;;  %v1090_v4 = vsel %vm2762_vm8, %v2211_v32, %v1086_v49  ;;  %vm1133_vm1 = vweird.f32 %v2217_v37 }
 0x396   : > { %v1105_v6 = vsel %vm2766_vm9, %v2213_v33, %v1101_v51  ;;  %v1095_v9 = vsel %vm2770_vm10, %v1094_v57, %v1090_v4  ;;  %vm1134_vm4 = vmor %vm1132_vm15, %vm1133_vm1  ;;  %v2075_v57 = vld [vmem:[%s2900_s3 + $0x38] sm:$0xff]  ;;  %vm1641_vm1 = vcmask 187392  }
 0x397   : > { %v1406_v13 = vpop.permute.xlu0 %1405  ;;  %v1129_v53 = vsub.f32 1.0, %v1128_v42  ;;  %v1110_v59 = vsel %vm1107_vm13, %v1109_v58, %v1105_v6  ;;  %v2078_v58 = vld [vmem:[%s2900_s3 + $0x50] sm:$0xff] }
 0x398   : > { %v1409_v14 = vadd.f32 %v1406_v13, %v1394_v48  ;;  %v1120_v13 = vsel %vm2778_vm14, %v2215_v41, %v1116_v62  ;;  %v1957_v6 = vld [vmem:[%s2901_s4 + $0x30] sm:$0xff] }
 0x399   : > { %v1130_v63 = vmul.f32 %v2217_v37, %v1129_v53  ;;  %v2035_v53 = vld [vmem:[%s2901_s4 + $0xa8] sm:$0xff] }
 0x39a   : > { %1994 = vmatmul.msk.bf16.vlgmr.msra.gmra.mxu0 %vm493_vm0, %v2074_v8  ;;  %v1138_v8 = vand.u32 2147483648, %v1081_v31 }
 0x39b   : > { %v1131_v48 = vadd.f32 %v2217_v37, %v1130_v63 }
 0x39c   : > { %v1401_v10 = vpop.permute.xlu1 %1400 }
 0x39d   : > { %v1408_v15 = vadd.f32 %v1401_v10, %v1393_v0  ;;  %v1143_v0 = vsel %vm1142_vm2, %v1095_v9, 0.0  ;;  %v1144_v10 = vsel %vm1142_vm2, %v1110_v59, 0.0 }
 0x39f   : > { %v2750_v16 = vpack.c.bf16 %v1409_v14, %v1408_v15  ;;  %v1139_v14 = vor.u32 1.1754944e-38, %v1138_v8  ;;  %v1125_v15 = vsel %vm1122_vm3, %v1124_v2, %v1120_v13  ;;  %v1425_v30 = vpop.permute.xlu0 %1424  ;;  %v2003_v2 = vld [vmem:[%s2901_s4 + $0x70] sm:$0xff]  ;;  %v1958_v13 = vld [vmem:[%s2901_s4 + $0x38] sm:$0xff] }
 0x3a0   : > { %v1146_v19 = vsel %vm1142_vm2, %v1125_v15, 0.0 }
 0x3a1   : > { %1442 = vmatpush.bf16.msrb.mxu3 %v2750_v16  ;;  %1480 = vmatpush.bf16.msrb.mxu0 %v2750_v16 }
 0x3a4   : > { %2022 = vmatmul.msk.bf16.vlgmr.msrb.gmra.mxu3 %vm493_vm0, %v2076_v17  ;;  %v1135_v17 = vsel %vm1134_vm4, %v2217_v37, %v1131_v48  ;;  %v1420_v27 = vpop.permute.xlu1 %1419  ;;  %v1700_v48 = vstv %s2055_s23  ;;  %vm1645_vm4 = vcmask 186368   ;;  %s394_s23 = scalar_lea.vmem [#allocation6], %s1923_s18 }
 0x3a5   : > { %v1140_v5 = vsel %vm1137_vm5, %v1139_v14, %v1135_v17  ;;  %v2004_v17 = vld [vmem:[%s2901_s4 + $0x78] sm:$0xff] }
 0x3a6   : > { %v1149_v20 = vsel %vm1148_vm6, %v1140_v5, 0.0  ;;  %vm1745_vm6 = vcmask 64512  }
 0x3a7   : > { %v982_v47 = vpop.permute.xlu0 %981 }
 0x3aa   : > { %2031 = vmatmul.msk.bf16.vlgmr.msrb.gmra.mxu0 %vm493_vm0, %v2077_v18  ;;  %v1145_v18 = vadd.f32 %v1144_v10, %v1143_v0 }
 0x3ac   : > { %v1147_v12 = vadd.f32 %v1146_v19, %v1145_v18  ;;  %v977_v31 = vpop.permute.xlu1 %976 }
 0x3ae   : > { %v1150_v21 = vadd.f32 %v1149_v20, %v1147_v12 }
 0x3af   : > { %v1463_v43 = vpop.permute.xlu0 %1462 }
 0x3b0   : > { %v1151_v22 = vrot.slane %v1150_v21, 4 }
 0x3b2   : > { %v1152_v23 = vadd.f32 %v1151_v22, %v1150_v21 }
 0x3b4   : > { %v1153_v25 = vrot.slane %v1152_v23, 2  ;;  %v1458_v44 = vpop.permute.xlu1 %1457 }
 0x3b6   : > { %v1154_v26 = vadd.f32 %v1153_v25, %v1152_v23 }
 0x3b8   : > { %v1155_v28 = vrot.slane %v1154_v26, 1 }
 0x3ba   : > { %v1156_v29 = vadd.f32 %v1155_v28, %v1154_v26 }
 0x3bc   : > { %v1158_v34 = vmul.f32 0.035714287, %v1156_v29 }
 0x407   : > { %v772_v24 = vpop.f32.mrf.mxu0 }
 0x408   : > { %v773_v1 = vadd.f32 %v1957_v6, %v772_v24 }
 0x40a   : > { %v777_v9 = vmax.f32 %v773_v1, 0.0 }
 0x40c   : > { %v1697_v10 = vmul.f32 %v1696_v11, %v777_v9 }
 0x40f   : > { %v2789_v7 = vpop.f32.mrf.mxu0 }
 0x410   : > { %v775_v14 = vadd.f32 %v1958_v13, %v2789_v7 }
 0x412   : > { %v778_v5 = vmax.f32 %v775_v14, 0.0 }
 0x414   : > { %v1698_v21 = vmul.f32 %v1696_v11, %v778_v5 }
 0x417   : > { %v1001_v32 = vpop.f32.mrf.mxu0 }
 0x418   : > { %v1002_v33 = vadd.f32 %v1001_v32, %v977_v31 }
 0x41a   : > { %v1159_v61 = vmul.f32 %v1158_v34, %v1002_v33 }
 0x41c   : > { %v1161_v41 = vsel %vm1142_vm2, %v1159_v61, 0.0 }
 0x41d   : > { %1162 = vadd.xlane.f32.xlu1 %v1161_v41 }
 0x41f   : > { %v1003_v35 = vpop.f32.mrf.mxu0 }
 0x420   : > { %v1004_v36 = vadd.f32 %v1003_v35, %v982_v47 }
 0x422   : > { %v1160_v37 = vmul.f32 %v1158_v34, %v1004_v36 }
 0x424   : > { %v1164_v38 = vsel %vm1142_vm2, %v1160_v37, 0.0 }
 0x425   : > { %1165 = vadd.xlane.f32.xlu0 %v1164_v38 }
 0x427   : > { %v1444_v39 = vpop.f32.mrf.mxu3  ;;  %v1482_v40 = vpop.f32.mrf.mxu0 }
 0x428   : > { %v1445_v42 = vadd.f32 %v1444_v39, %v1420_v27  ;;  %v1483_v49 = vadd.f32 %v1482_v40, %v1458_v44 }
 0x42a   : > { %1525 = vxpose.xlu2.b32.start [1/2] (short) (narrow) %v1445_v42, 24 }
 0x42f   : > { %v1446_v45 = vpop.f32.mrf.mxu3  ;;  %v1484_v46 = vpop.f32.mrf.mxu0 }
 0x430   : > { %v1447_v50 = vadd.f32 %v1446_v45, %v1425_v30  ;;  %v1485_v51 = vadd.f32 %v1484_v46, %v1463_v43 }
 0x432   : > { %v1559_v52 = vpack.c.bf16 %v1485_v51, %v1483_v49  ;;  %1526 = vxpose.xlu2.b32.end [2/2] (short) (narrow) %v1447_v50, 24 }
 0x434   : > { %1573 = vmatpush.bf16.msra.mxu3 %v1559_v52 }
 0x436   : > { %1500 = vperm.xlu1 %2184, %v2035_v53  }
 0x490   : > { %v1163_v54 = vpop.xlane.xlu1 %1162 }
 0x494   : > { %2185 = vset.pattern.permute.xlu2 %v2326_v3 }
 0x498   : > { %v1166_v55 = vpop.xlane.xlu0 %1165 }
 0x499   : > { %v1170_v56 = vpack.c.bf16 %v1166_v55, %v1163_v54 }
 0x49b   : > { %1189 = vmatpush.bf16.msra.mxu2 %v1170_v56 }
 0x49e   : > { %2009 = vmatmul.msk.bf16.vlgmr.msra.gmra.mxu2 %vm493_vm0, %v2075_v57 }
 0x49f   : > { %1518 = vmatpush.bf16.msrb.mxu2 %v2750_v16  ;;  %v2034_v16 = vld [vmem:[%s2901_s4 + $0xa0] sm:$0xff] }
 0x4a3   : > { %1495 = vperm.xlu2 %2185, %v2034_v16  }
 0x4ae   : > { %2040 = vmatmul.msk.bf16.vlgmr.msrb.gmra.mxu2 %vm493_vm0, %v2078_v58 }
 0x4c3   : > { %v1541_v60 = vpop.trf.xlu2 }
 0x4cb   : > { %v1542_v3 = vpop.trf.xlu2 }
 0x4cc   : > { %v1557_v62 = vpack.c.bf16 %v1542_v3, %v1541_v60 }
 0x4ce   : > { %2041 = vmatmul.msk.bf16.vlgmr.msra.gmra.mxu3 %vm493_vm0, %v1557_v62 }
 0x4d3   : > { %v1543_v63 = vpop.trf.xlu2 }
 0x4d4   : > { %v1558_v4 = vpack.c.bf16 %v1543_v63, %v1543_v63 }
 0x4de   : > { %2042 = vmatmul.msk.bf16.gmra.mxu3 %vm493_vm0, %v1558_v4 }
 0x4fd   : > { %v1496_v14 = vpop.permute.xlu2 %1495 }
 0x521   : > { %v1191_v8 = vpop.f32.mrf.mxu2 }
 0x522   : > { %v1192_v59 = vadd.f32 %v2003_v2, %v1191_v8 }
 0x524   : > { %v1196_v0 = vmax.f32 %v1192_v59, 0.0 }
 0x526   : > { %v1701_v15 = vmul.f32 %v1700_v48, %v1196_v0 }
 0x528   : > { %v2824_v18 = vadd.f32 %v1701_v15, %v1697_v10 }
 0x529   : > { %v1193_v19 = vpop.f32.mrf.mxu2 }
 0x52a   : > { %v1194_v12 = vadd.f32 %v2004_v17, %v1193_v19 }
 0x52c   : > { %v1197_v20 = vmax.f32 %v1194_v12, 0.0 }
 0x52e   : > { %v1702_v22 = vmul.f32 %v1700_v48, %v1197_v20 }
 0x530   : > { %v2826_v23 = vadd.f32 %v1702_v22, %v1698_v21  ;;  %v1501_v22 = vpop.permute.xlu1 %1500 }
 0x531   : > { %v1520_v0 = vpop.f32.mrf.mxu2 }
 0x532   : > { %v1521_v17 = vadd.f32 %v1520_v0, %v1496_v14 }
 0x539   : > { %v1522_v20 = vpop.f32.mrf.mxu2 }
 0x551   : > { %v1575_v24 = vpop.f32.mrf.mxu3 }
 0x552   : > { %v2043_v25 = vmul.f32 -1.442695, %v1575_v24  ;;  %v1523_v24 = vadd.f32 %v1522_v20, %v1501_v22  ;;  %v2238_v22 = vld [vmem:[%s2475_s12] sm:$0xff] }
 0x554   : > { %2218 = vpow2.f32 %v2043_v25 }
 0x559   : > { %v1577_v26 = vpop.f32.mrf.mxu3 }
 0x55a   : > { %v2219_v27 = vpop.eup %2218  ;;  %v2044_v7 = vmul.f32 -1.442695, %v1577_v26 }
 0x55b   : > { %v1593_v28 = vadd.f32 1.0, %v2219_v27 }
 0x55c   : > { %2220 = vpow2.f32 %v2044_v7 }
 0x55d   : > { %2222 = vrcp.f32 %v1593_v28  ;;  %v1607_v49 = vand.u32 2147483648, %v1593_v28  ;;  %vm1601_vm11 = vweird.f32 %v1593_v28  ;;  %v1605_v51 = vand.u32 2147483647, %v1593_v28 }
 0x55f   : > { %v1608_v57 = vor.u32 1.1754944e-38, %v1607_v49  ;;  %vm1606_vm15 = vcmp.eq.f32.partialorder %v1605_v51, 8.507059e+37  ;;  %v1743_v51 = vld [vmem:[%s2907_s10] sm:$0xff] }
 0x561   : > { %v1580_v29 = vpop.f32.mrf.mxu3 }
 0x562   : > { %v2221_v30 = vpop.eup %2220  ;;  %v2045_v31 = vmul.f32 -1.442695, %v1580_v29  ;;  %v2079_v29 = vld [vmem:[%s2900_s3 + $0x58] sm:$0xff] }
 0x563   : > { %v2223_v32 = vpop.eup %2222  ;;  %v1594_v33 = vadd.f32 1.0, %v2221_v30  ;;  %v2048_v30 = vld [vmem:[%s2901_s4 + $0xb0] sm:$0xff] }
 0x564   : > { %2224 = vpow2.f32 %v2045_v31  ;;  %v1597_v34 = vmul.f32 %v2223_v32, %v1593_v28  ;;  %vm1602_vm8 = vweird.f32 %v2223_v32 }
 0x565   : > { %2226 = vrcp.f32 %v1594_v33  ;;  %v1622_v42 = vand.u32 2147483648, %v1594_v33  ;;  %vm1616_vm9 = vweird.f32 %v1594_v33  ;;  %v1620_v45 = vand.u32 2147483647, %v1594_v33  ;;  %vm1603_vm12 = vmor %vm1601_vm11, %vm1602_vm8 }
 0x566   : > { %v1598_v47 = vsub.f32 1.0, %v1597_v34 }
 0x567   : > { %v1623_v53 = vor.u32 1.1754944e-38, %v1622_v42  ;;  %vm1621_vm13 = vcmp.eq.f32.partialorder %v1620_v45, 8.507059e+37  ;;  %v1716_v45 = vld [vmem:[%s2905_s8] sm:$0xff] }
 0x568   : > { %v1599_v38 = vmul.f32 %v2223_v32, %v1598_v47 }
 0x569   : > { %v1582_v61 = vpop.f32.mrf.mxu3 }
 0x56a   : > { %v2225_v41 = vpop.eup %2224  ;;  %v1600_v43 = vadd.f32 %v2223_v32, %v1599_v38  ;;  %v1706_v61 = vstv %s2056_s16 }
 0x56b   : > { %v2227_v35 = vpop.eup %2226  ;;  %v1595_v36 = vadd.f32 1.0, %v2225_v41 }
 0x56c   : > { %v1612_v37 = vmul.f32 %v2227_v35, %v1594_v33  ;;  %vm1617_vm7 = vweird.f32 %v2227_v35  ;;  %v1604_v55 = vsel %vm1603_vm12, %v2223_v32, %v1600_v43  ;;  %v2049_v33 = vld [vmem:[%s2901_s4 + $0xb8] sm:$0xff] }
 0x56d   : > { %2228 = vrcp.f32 %v1595_v36  ;;  %vm1618_vm10 = vmor %vm1616_vm9, %vm1617_vm7  ;;  %v1637_v56 = vand.u32 2147483648, %v1595_v36  ;;  %v1635_v3 = vand.u32 2147483647, %v1595_v36  ;;  %v1609_v62 = vsel %vm1606_vm15, %v1608_v57, %v1604_v55  ;;  %v1744_v55 = vld [vmem:[%s2907_s10 + $0x8] sm:$0xff] }
 0x56e   : > { %v1613_v39 = vsub.f32 1.0, %v1612_v37  ;;  %vm1631_vm2 = vweird.f32 %v1595_v36  ;;  %v1642_v1 = vsel %vm1641_vm1, %v1609_v62, 0.0 }
 0x56f   : > { %v1638_v16 = vor.u32 1.1754944e-38, %v1637_v56  ;;  %vm1636_vm5 = vcmp.eq.f32.partialorder %v1635_v3, 8.507059e+37 }
 0x570   : > { %v1614_v40 = vmul.f32 %v2227_v35, %v1613_v39 }
 0x572   : > { %v1615_v44 = vadd.f32 %v2227_v35, %v1614_v40  ;;  %v1712_v40 = vstv %s1711_s25  ;;  %s1840_s25 = sshll.u32 %s394_s23, 4  ;;  %s1841_s25 = int_to_ptr.vmem [resolvable:$true] %s1840_s25 }
 0x573   : > { %v2229_v46 = vpop.eup %2228 }
 0x574   : > { %v1627_v50 = vmul.f32 %v2229_v46, %v1595_v36  ;;  %v1619_v52 = vsel %vm1618_vm10, %v2227_v35, %v1615_v44  ;;  %vm1632_vm14 = vweird.f32 %v2229_v46  ;;  %v1715_v44 = vld [vmem:[%s2904_s7] sm:$0xff] }
 0x575   : > { %v1624_v58 = vsel %vm1621_vm13, %v1623_v53, %v1619_v52  ;;  %vm1633_vm3 = vmor %vm1631_vm2, %vm1632_vm14 }
 0x576   : > { %v1628_v54 = vsub.f32 1.0, %v1627_v50  ;;  %v1643_v4 = vsel %vm1641_vm1, %v1624_v58, 0.0  ;;  %v1742_v50 = vld [vmem:[%s2906_s9 + $0x8] sm:$0xff] }
 0x577   : > { %v1644_v8 = vadd.f32 %v1643_v4, %v1642_v1 }
 0x578   : > { %v1629_v60 = vmul.f32 %v2229_v46, %v1628_v54 }
 0x57a   : > { %v1630_v63 = vadd.f32 %v2229_v46, %v1629_v60 }
 0x57c   : > { %v1634_v6 = vsel %vm1633_vm3, %v2229_v46, %v1630_v63 }
 0x57d   : > { %v1639_v2 = vsel %vm1636_vm5, %v1638_v16, %v1634_v6 }
 0x57e   : > { %v1646_v9 = vsel %vm1645_vm4, %v1639_v2, 0.0 }
 0x57f   : > { %v1647_v59 = vadd.f32 %v1646_v9, %v1644_v8 }
 0x581   : > { %v1648_v11 = vrot.slane %v1647_v59, 4 }
 0x583   : > { %v1649_v13 = vadd.f32 %v1648_v11, %v1647_v59 }
 0x585   : > { %v1650_v48 = vrot.slane %v1649_v13, 2 }
 0x587   : > { %v1651_v10 = vadd.f32 %v1650_v48, %v1649_v13 }
 0x589   : > { %v1652_v15 = vrot.slane %v1651_v10, 1 }
 0x58b   : > { %v1653_v19 = vadd.f32 %v1652_v15, %v1651_v10 }
 0x58d   : > { %v1655_v5 = vmul.f32 0.04347826, %v1653_v19 }
 0x58f   : > { %v1656_v12 = vmul.f32 %v1655_v5, %v1521_v17  ;;  %v1657_v25 = vmul.f32 %v1655_v5, %v1523_v24 }
 0x591   : > { %v1658_v21 = vsel %vm1641_vm1, %v1656_v12, 0.0  ;;  %v1661_v26 = vsel %vm1641_vm1, %v1657_v25, 0.0 }
 0x592   : > { %1659 = vadd.xlane.f32.xlu0 %v1658_v21 }
 0x59a   : > { %1662 = vadd.xlane.f32.xlu0 %v1661_v26  ;;  %v2239_v26 = vld [vmem:[%s2475_s12 + $0x8] sm:$0xff] }
 0x605   : > { %v1660_v27 = vpop.xlane.xlu0 %1659 }
 0x60d   : > { %v1663_v7 = vpop.xlane.xlu0 %1662 }
 0x60e   : > { %v1667_v28 = vpack.c.bf16 %v1663_v7, %v1660_v27 }
 0x610   : > { %1686 = vmatpush.bf16.msra.mxu0 %v1667_v28 }
 0x613   : > { %2054 = vmatmul.msk.bf16.vlgmr.msra.gmra.mxu0 %vm493_vm0, %v2079_v29 }
 0x690   : > { %v1688_v31 = vpop.f32.mrf.mxu0 }
 0x691   : > { %v1689_v32 = vadd.f32 %v2048_v30, %v1688_v31 }
 0x693   : > { %v1693_v34 = vmax.f32 %v1689_v32, 0.0 }
 0x695   : > { %v1707_v35 = vmul.f32 %v1706_v61, %v1693_v34 }
 0x697   : > { %v1709_v38 = vadd.f32 %v1707_v35, %v2824_v18 }
 0x698   : > { %v1690_v41 = vpop.f32.mrf.mxu0 }
 0x699   : > { %v1691_v47 = vadd.f32 %v2049_v33, %v1690_v41  ;;  %v1713_v43 = vadd.f32 %v1712_v40, %v1709_v38 }
 0x69b   : > { %v1694_v36 = vmax.f32 %v1691_v47, 0.0 }
 0x69d   : > { %v1708_v37 = vmul.f32 %v1706_v61, %v1694_v36 }
 0x69f   : > { %v1710_v39 = vadd.f32 %v1708_v37, %v2826_v23  ;;  %v1741_v23 = vld [vmem:[%s2906_s9] sm:$0xff] }
 0x6a1   : > { %v1714_v42 = vadd.f32 %v1712_v40, %v1710_v39 }
 0x6a3   : > { %1734 = vmatpush.msrb.mxu1 %v1714_v42 }
 0x6a5   : > { %1735 = vmatpush.msrb.mxu1 %v1713_v43 }
 0x6a6   : > { %2057 = vmatmul.msk.f32.vlgmr.msrb.gmra.mxu1 %vm493_vm0, %v1715_v44 }
 0x723   : > { %v1737_v46 = vpop.f32.mrf.mxu1 }
 0x724   : > { %v1738_v49 = vadd.f32 %v1737_v46, %v1716_v45 }
 0x726   : > { %v1740_v18 = vmax.f32 %v1738_v49, 0.0 }
 0x728   : > { %1767 = vmatpush.msra.mxu2 %v1740_v18 }
 0x729   : > { %2058 = vmatmul.msk.f32.vlgmr.msra.gmra.mxu2 %vm1745_vm6, %v1741_v23 }
 0x731   : > { %2059 = vmatmul.msk.f32.gmra.mxu2 %vm1745_vm6, %v1742_v50 }
 0x7ac   : > { %v1769_v52 = vpop.f32.mrf.mxu2 }
 0x7ad   : > { %v1770_v53 = vadd.f32 %v1769_v52, %v1743_v51 }
 0x7af   : > { %v2060_v54 = vmul.f32 -1.442695, %v1770_v53 }
 0x7b1   : > { %2230 = vpow2.f32 %v2060_v54 }
 0x7b4   : > { %v1772_v56 = vpop.f32.mrf.mxu2 }
 0x7b5   : > { %v1773_v57 = vadd.f32 %v1772_v56, %v1744_v55 }
 0x7b7   : > { %v2231_v58 = vpop.eup %2230  ;;  %v2061_v60 = vmul.f32 -1.442695, %v1773_v57 }
 0x7b8   : > { %v1781_v3 = vadd.f32 1.0, %v2231_v58 }
 0x7b9   : > { %2232 = vpow2.f32 %v2061_v60 }
 0x7ba   : > { %2234 = vrcp.f32 %v1781_v3  ;;  %v1794_v1 = vand.u32 2147483648, %v1781_v3  ;;  %v1792_v8 = vand.u32 2147483647, %v1781_v3  ;;  %vm1788_vm7 = vweird.f32 %v1781_v3 }
 0x7bc   : > { %v1795_v11 = vor.u32 1.1754944e-38, %v1794_v1  ;;  %vm1793_vm9 = vcmp.eq.f32.partialorder %v1792_v8, 8.507059e+37 }
 0x7bf   : > { %v2233_v62 = vpop.eup %2232 }
 0x7c0   : > { %v2235_v63 = vpop.eup %2234  ;;  %v1782_v4 = vadd.f32 1.0, %v2233_v62 }
 0x7c1   : > { %v1784_v16 = vmul.f32 %v2235_v63, %v1781_v3  ;;  %vm1789_vm0 = vweird.f32 %v2235_v63 }
 0x7c2   : > { %2236 = vrcp.f32 %v1782_v4  ;;  %vm1790_vm8 = vmor %vm1788_vm7, %vm1789_vm0  ;;  %v1809_v14 = vand.u32 2147483648, %v1782_v4  ;;  %v1807_v17 = vand.u32 2147483647, %v1782_v4  ;;  %vm1803_vm11 = vweird.f32 %v1782_v4 }
 0x7c3   : > { %v1785_v6 = vsub.f32 1.0, %v1784_v16 }
 0x7c4   : > { %v1810_v5 = vor.u32 1.1754944e-38, %v1809_v14  ;;  %vm1808_vm13 = vcmp.eq.f32.partialorder %v1807_v17, 8.507059e+37 }
 0x7c5   : > { %v1786_v2 = vmul.f32 %v2235_v63, %v1785_v6 }
 0x7c7   : > { %v1787_v9 = vadd.f32 %v2235_v63, %v1786_v2 }
 0x7c8   : > { %v2237_v59 = vpop.eup %2236 }
 0x7c9   : > { %v1791_v13 = vsel %vm1790_vm8, %v2235_v63, %v1787_v9  ;;  %v1799_v48 = vmul.f32 %v2237_v59, %v1782_v4  ;;  %vm1804_vm10 = vweird.f32 %v2237_v59 }
 0x7ca   : > { %v1796_v0 = vsel %vm1793_vm9, %v1795_v11, %v1791_v13  ;;  %vm1805_vm12 = vmor %vm1803_vm11, %vm1804_vm10 }
 0x7cb   : > { %1815 = vperm.xlu0 %2182, %v1796_v0   ;;  %v1800_v10 = vsub.f32 1.0, %v1799_v48 }
 0x7cd   : > { %v1801_v15 = vmul.f32 %v2237_v59, %v1800_v10 }
 0x7cf   : > { %v1802_v19 = vadd.f32 %v2237_v59, %v1801_v15 }
 0x7d1   : > { %v1806_v12 = vsel %vm1805_vm12, %v2237_v59, %v1802_v19 }
 0x7d2   : > { %v1811_v20 = vsel %vm1808_vm13, %v1810_v5, %v1806_v12 }
 0x7d3   : > { %1820 = vperm.xlu1 %2184, %v1811_v20  }
 0x83d   : > { %v1816_v21 = vpop.permute.xlu0 %1815 }
 0x83e   : > { %v1823_v24 = vmul.f32 %v2238_v22, %v1816_v21 }
 0x840   : > { %1825 = vst [vmem:[%s394_s23] sm:$0xff] %v1823_v24 }
 0x845   : > { %v1821_v25 = vpop.permute.xlu1 %1820 }
 0x846   : > { %v1824_v27 = vmul.f32 %v2239_v26, %v1821_v25 }
 0x848   : > { %1826 = vst [vmem:[%s394_s23 + $0x8] sm:$0xff] %v1824_v27 }
 0x849   : > { %2282 = shalt.err (!%p2279_p8)
}
 0x84a   : > { %s2343_s12 = smov 128   ;;  %s2344_s15 = smov 8  }
 0x84b   : > { %2085 = dma.vmem_to_hbm [thread:$0]  (%p2446_p5), %s1841_s25, 256, %s1843_s26, %s1828_s30, %s2343_s12, %s2343_s12, %s2344_s15  }
 0x84c PF: > { %p2097_p9 = scmp.ge.s32.totalorder %s2321_s22, 2  ;;  %s1857_s1 = sand.u32 1, %s2309_s19  }
 0x84d   : > { %s1858_s23 = scalar_lea.sflag [#allocation4], %s1857_s1 }
 0x84e   : > { %p2092_p10 = pnand %p2097_p9, %p2450_p6 }
 0x850   : > { %p2093_p11 = pneg %p2092_p10 }
 0x852   : > { %2304 = dma.done.wait (%p2093_p11), %s1858_s23, 256  }
 0x853   : > { %2306 = vsyncadd (%p2093_p11), %s1858_s23, 4294967040  ;;  %p23_p12 = scmp.ge.s32.totalorder %s2433_s24, 6   ;;  %s2933_s19 = smov %s2313_s20 }
 0x854   : > { %s2934_s20 = smov %s2317_s21  ;;  %s2935_s21 = smov %s2444_s27 }
 0x855   : > { %s2936_s22 = smov %s2433_s24  ;;  %25 = sbr.rel (!%p23_p12) target bundleno = 8 (0x8), region = 130 }
 0x85a   :  { %1864 = vsyncpa [#allocation4], 1 }
 0x85b   :  { %1866 = vsyncpa [#allocation4 + $0x1], 1 }
 0x85c   :  { %1867 = vsyncpa [#allocation5], 1 }
 0x85d   :  { %1869 = vsyncpa [#allocation5 + $0x1], 1 }

</bundles_post_ra>
